<compile_context>
chip_gen: v5e
topology: v5e:2x2
jax: 0.10.0
libtpu: 0.0.40
codegen_flags: <defaults>
</compile_context>

<pallas_src>
import numpy as np
import jax
import jax.numpy as jnp
from jax.experimental import pallas as pl
from jax.experimental.pallas import tpu as pltpu

EPS = 1e-5


# ---------------------------------------------------------------------------
# In-kernel building blocks
# ---------------------------------------------------------------------------
def _conv3x3_stacked(x, w_ref, mask_ref, img_w, lanes):
    """3x3 SAME conv as ONE stacked-contraction matmul.

    x:        (Cin, lanes) f32 slab (channels on sublanes, N*H*W on lanes).
    w_ref:    (Cout, 9*Cin) bf16; column t*Cin + c  <->  tap t, input chan c.
    mask_ref: (9, 1, lanes) f32 boundary-validity masks (trace-time constants).
    Returns   (Cout, lanes) f32.

    Each tap is a lane rotation of the slab; the mask zeroes positions where
    the tap crosses an image border (conv padding=1) and where the circular
    roll wraps across image/batch boundaries.  The mask multiply is fused into
    the bf16 cast.  Stacking the 9 taps along the contraction axis gives
    K = 9*Cin, feeding the 128/256-deep MXU with one matmul instead of nine.
    """
    bands = []
    for t in range(9):
        sh, sw = t // 3 - 1, t % 3 - 1
        d = sh * img_w + sw
        if d == 0:
            tap = x                                        # center tap, mask == 1
        else:
            tap = pltpu.roll(x, (-d) % lanes, axis=1) * mask_ref[t]
        bands.append(tap.astype(jnp.bfloat16))
    taps = jnp.concatenate(bands, axis=0)                  # (9*Cin, lanes) bf16
    return jnp.dot(w_ref[...], taps, preferred_element_type=jnp.float32)


def _bn_train(y, gamma, beta, count):
    """Training-mode BatchNorm2d (biased batch stats) applied in-kernel.

    Two-pass (centered) variance avoids E[x^2] - mean^2 cancellation; the
    rsqrt goes to the EUP (separate bundle slot).  gamma/beta are (C, 1).
    """
    inv = 1.0 / count
    mean = jnp.sum(y, axis=1, keepdims=True) * inv
    c = y - mean
    var = jnp.sum(c * c, axis=1, keepdims=True) * inv
    return c * (gamma * jax.lax.rsqrt(var + EPS)) + beta


# ---------------------------------------------------------------------------
# Kernels
# ---------------------------------------------------------------------------
def _make_fused_kernel(img_w, lanes, count):
    """conv1 -> bn1 -> relu -> conv2 -> bn2 -> +x -> relu, whole batch in VMEM."""

    def kernel(x_ref, mask_ref, w1_ref, w2_ref,
               g1_ref, b1_ref, g2_ref, b2_ref, out_ref):
        x = x_ref[...]                                             # (C, L) f32
        y1 = _conv3x3_stacked(x, w1_ref, mask_ref, img_w, lanes)
        h = jnp.maximum(_bn_train(y1, g1_ref[...], b1_ref[...], count), 0.0)
        y2 = _conv3x3_stacked(h, w2_ref, mask_ref, img_w, lanes)
        out = jnp.maximum(_bn_train(y2, g2_ref[...], b2_ref[...], count) + x, 0.0)
        out_ref[...] = out.astype(out_ref.dtype)

    return kernel


def _make_conv_pass_kernel(img_w, lanes, fuse_bn_relu):
    """Tiled-path pass: (optional BN-affine + ReLU) + conv3x3 + BN partial sums."""

    def _finish(h, mask_ref, w_ref, y_ref, sum_ref, ssq_ref):
        y = _conv3x3_stacked(h, w_ref, mask_ref, img_w, lanes)
        sum_ref[0] = jnp.sum(y, axis=1, keepdims=True)
        ssq_ref[0] = jnp.sum(y * y, axis=1, keepdims=True)
        y_ref[...] = y.astype(y_ref.dtype)

    if fuse_bn_relu:
        def kernel(x_ref, scale_ref, shift_ref, mask_ref, w_ref,
                   y_ref, sum_ref, ssq_ref):
            h = jnp.maximum(
                x_ref[...].astype(jnp.float32) * scale_ref[...] + shift_ref[...],
                0.0)
            _finish(h, mask_ref, w_ref, y_ref, sum_ref, ssq_ref)
    else:
        def kernel(x_ref, mask_ref, w_ref, y_ref, sum_ref, ssq_ref):
            _finish(x_ref[...].astype(jnp.float32),
                    mask_ref, w_ref, y_ref, sum_ref, ssq_ref)
    return kernel


def _finalize_kernel(y2_ref, x_ref, scale_ref, shift_ref, out_ref):
    """out = relu(bn2(conv2_out) + identity)."""
    y2 = y2_ref[...].astype(jnp.float32)
    out_ref[...] = jnp.maximum(y2 * scale_ref[...] + shift_ref[...] + x_ref[...], 0.0)


# ---------------------------------------------------------------------------
# Host-side helpers
# ---------------------------------------------------------------------------
def _build_tap_masks(H, W, n_images):
    """(9, 1, n_images*H*W) f32 validity masks for the 3x3 taps (trace-time)."""
    HW = H * W
    L = n_images * HW
    pos = np.arange(L) % HW
    row, col = pos // W, pos % W
    masks = np.empty((9, 1, L), np.float32)
    for t in range(9):
        sh, sw = t // 3 - 1, t % 3 - 1
        valid = ((row + sh >= 0) & (row + sh < H) &
                 (col + sw >= 0) & (col + sw < W))
        masks[t, 0] = valid.astype(np.float32)
    return jnp.asarray(masks)


def _vmem_capacity_bytes():
    try:
        cap = getattr(pltpu.get_tpu_info(), "vmem_capacity_bytes", None)
        if cap:
            return int(cap)
    except Exception:
        pass
    return 128 * 2 ** 20          # conservative default (v5e/v6e-sized part)


def _fused_footprint_bytes(C, L):
    # x, y1/h, y2, centered temps, out in f32 + bf16 tap slab + masks + weights.
    return (7 * C * L * 4) + (9 * C * L * 2) + (9 * L * 4) + (2 * 9 * C * C * 2)


def _tile_footprint_bytes(C, Lb):
    # double-buffered in (f32) + out (bf16) blocks, tap slab, f32 temporaries.
    return (2 * (C * Lb * 4 + C * Lb * 2) + 9 * C * Lb * 2
            + 4 * C * Lb * 4 + 9 * Lb * 4 + 2 * 9 * C * C * 2)


def _vmem_limit_bytes(cap, need):
    # Generation-aware scoped-VMEM budget: <=~75% of physical (≈48 MiB on the
    # 64-MiB v7x parts, ≈96 MiB on the 128-MiB v5e/v6e parts), but at least
    # what the kernel needs (with slack) and a 32 MiB floor.
    ceiling = (cap * 3) // 4
    want = max(32 * 2 ** 20, (int(need) * 5) // 4)
    return int(max(16 * 2 ** 20, min(ceiling, want)))


def _pick_images_per_step(N, C, HW, budget_bytes):
    """Largest images-per-step whose block fits the budget and is lane-legal."""
    legal = [nb for nb in range(1, N + 1)
             if N % nb == 0 and ((nb * HW) % 128 == 0 or nb == N)]
    fitting = [nb for nb in legal if _tile_footprint_bytes(C, nb * HW) <= budget_bytes]
    if fitting:
        return max(fitting)
    # TODO(synk): H-row tiling with a 1-row halo when even one image is too big.
    return min(legal)


def _fold_bn(psum, psumsq, gamma, beta, count):
    """Fold per-block BN partial sums into scale/shift (tiled path, tiny XLA)."""
    total = jnp.sum(psum, axis=0)[:, 0]          # (C,)
    total_sq = jnp.sum(psumsq, axis=0)[:, 0]
    mean = total / count
    var = jnp.maximum(total_sq / count - mean * mean, 0.0)   # guard cancellation
    scale = gamma * jax.lax.rsqrt(var + EPS)
    shift = beta - mean * scale
    return scale.reshape(-1, 1), shift.reshape(-1, 1)


def _full_spec(shape):
    n = len(shape)
    return pl.BlockSpec(shape, lambda *_: (0,) * n)


# ---------------------------------------------------------------------------
# Residual block
# ---------------------------------------------------------------------------
def residual_block(x_nchw, w1, w2, g1, b1, g2, b2, mode="auto"):
    """x: (N, C, H, W) f32; w1/w2: (3, 3, Cin, Cout) HWIO; g*/b*: (C,)."""
    assert mode in ("auto", "fused", "tiled")
    N, C, H, W = x_nchw.shape
    HW = H * W
    L = N * HW

    # Channels on sublanes, batch*spatial on lanes.
    x_slab = jnp.transpose(x_nchw, (1, 0, 2, 3)).reshape(C, L)
    # HWIO -> (Cout, 9*Cin) bf16 MXU operands (K = 9*Cin stacked contraction).
    w1_m = jnp.transpose(w1.reshape(9, C, C), (2, 0, 1)).reshape(C, 9 * C).astype(jnp.bfloat16)
    w2_m = jnp.transpose(w2.reshape(9, C, C), (2, 0, 1)).reshape(C, 9 * C).astype(jnp.bfloat16)

    cap = _vmem_capacity_bytes()
    fused_bytes = _fused_footprint_bytes(C, L)
    use_fused = (mode == "fused") or (mode == "auto" and fused_bytes <= (cap * 45) // 100)

    if use_fused:
        mask = _build_tap_masks(H, W, N)                       # (9, 1, L)
        g1c, b1c, g2c, b2c = (v.reshape(C, 1).astype(jnp.float32)
                              for v in (g1, b1, g2, b2))
        out_slab = pl.pallas_call(
            _make_fused_kernel(W, L, float(L)),
            grid=(1,),
            in_specs=[_full_spec((C, L)), _full_spec((9, 1, L)),
                      _full_spec((C, 9 * C)), _full_spec((C, 9 * C)),
                      _full_spec((C, 1)), _full_spec((C, 1)),
                      _full_spec((C, 1)), _full_spec((C, 1))],
            out_specs=_full_spec((C, L)),
            out_shape=jax.ShapeDtypeStruct((C, L), jnp.float32),
            compiler_params=pltpu.CompilerParams(
                dimension_semantics=("arbitrary",),
                vmem_limit_bytes=_vmem_limit_bytes(cap, fused_bytes)),
        )(x_slab, mask, w1_m, w2_m, g1c, b1c, g2c, b2c)
        return out_slab.reshape(C, N, H, W).transpose(1, 0, 2, 3)

    # ------------------------- 3-pass tiled fallback -------------------------
    Nb = _pick_images_per_step(N, C, HW, (cap * 45) // 100)
    Lb = Nb * HW
    G = N // Nb
    mask = _build_tap_masks(H, W, Nb)                          # (9, 1, Lb)
    cparams = pltpu.CompilerParams(
        dimension_semantics=("parallel",),
        vmem_limit_bytes=_vmem_limit_bytes(cap, _tile_footprint_bytes(C, Lb)))

    img_spec = pl.BlockSpec((C, Lb), lambda i: (0, i))
    mask_spec = pl.BlockSpec((9, 1, Lb), lambda i: (0, 0, 0))
    w_spec = pl.BlockSpec((C, 9 * C), lambda i: (0, 0))
    vec_spec = pl.BlockSpec((C, 1), lambda i: (0, 0))
    stat_spec = pl.BlockSpec((1, C, 1), lambda i: (i, 0, 0))
    stats_shape = jax.ShapeDtypeStruct((G, C, 1), jnp.float32)

    # Pass 1: conv1 + BN1 partial sums.  y1 kept in bf16 (halved HBM traffic).
    y1, s1, q1 = pl.pallas_call(
        _make_conv_pass_kernel(W, Lb, fuse_bn_relu=False),
        grid=(G,),
        in_specs=[img_spec, mask_spec, w_spec],
        out_specs=(img_spec, stat_spec, stat_spec),
        out_shape=(jax.ShapeDtypeStruct((C, L), jnp.bfloat16), stats_shape, stats_shape),
        compiler_params=cparams,
    )(x_slab, mask, w1_m)
    scale1, shift1 = _fold_bn(s1, q1, g1, b1, float(L))

    # Pass 2: bn1-affine + relu + conv2 + BN2 partial sums.  y2 also bf16.
    # (BN1 stats come from the exact f32 conv1 accumulator but are applied to
    #  the bf16-rounded y1 -- a systematic rounding within the tolerance.)
    y2, s2, q2 = pl.pallas_call(
        _make_conv_pass_kernel(W, Lb, fuse_bn_relu=True),
        grid=(G,),
        in_specs=[img_spec, vec_spec, vec_spec, mask_spec, w_spec],
        out_specs=(img_spec, stat_spec, stat_spec),
        out_shape=(jax.ShapeDtypeStruct((C, L), jnp.bfloat16), stats_shape, stats_shape),
        compiler_params=cparams,
    )(y1, scale1, shift1, mask, w2_m)
    scale2, shift2 = _fold_bn(s2, q2, g2, b2, float(L))

    # Pass 3: bn2-affine + identity shortcut (kept f32) + relu.
    out_slab = pl.pallas_call(
        _finalize_kernel,
        grid=(G,),
        in_specs=[img_spec, img_spec, vec_spec, vec_spec],
        out_specs=img_spec,
        out_shape=jax.ShapeDtypeStruct((C, L), jnp.float32),
        compiler_params=cparams,
    )(y2, x_slab, scale2, shift2)
    return out_slab.reshape(C, N, H, W).transpose(1, 0, 2, 3)


residual_block_jit = jax.jit(residual_block, static_argnames=("mode",))


# ---------------------------------------------------------------------------
# Pure-JAX reference (same training-mode-BN forward semantics)
# ---------------------------------------------------------------------------
def _reference(x_nchw, w1, w2, g1, b1, g2, b2):
    def conv(x, w):
        return jax.lax.conv_general_dilated(
            x, w, window_strides=(1, 1), padding="SAME",
            dimension_numbers=("NCHW", "HWIO", "NCHW"),
            precision=jax.lax.Precision.HIGHEST)

    def bn(y, g, b):
        mean = jnp.mean(y, axis=(0, 2, 3), keepdims=True)
        var = jnp.mean((y - mean) ** 2, axis=(0, 2, 3), keepdims=True)
        return ((y - mean) * jax.lax.rsqrt(var + EPS) * g.reshape(1, -1, 1, 1)
                + b.reshape(1, -1, 1, 1))

    out = jnp.maximum(bn(conv(x_nchw, w1), g1, b1), 0.0)
    out = bn(conv(out, w2), g2, b2)
    return jnp.maximum(out + x_nchw, 0.0)


if __name__ == "__main__":
    # Small shapes matching the module: batch=2, channels=4, spatial=16 (NCHW).
    N, C, H, W = 2, 4, 16, 16

    key = jax.random.PRNGKey(0)
    kx, kw1, kw2 = jax.random.split(key, 3)
    x = jax.random.normal(kx, (N, C, H, W), dtype=jnp.float32)

    fan_in = C * 3 * 3
    w1 = jax.random.normal(kw1, (3, 3, C, C), dtype=jnp.float32) * (fan_in ** -0.5)
    w2 = jax.random.normal(kw2, (3, 3, C, C), dtype=jnp.float32) * (fan_in ** -0.5)
    g1 = jnp.ones((C,), jnp.float32)    # BatchNorm2d default weight
    b1 = jnp.zeros((C,), jnp.float32)   # BatchNorm2d default bias
    g2 = jnp.ones((C,), jnp.float32)
    b2 = jnp.zeros((C,), jnp.float32)

    ref = _reference(x, w1, w2, g1, b1, g2, b2)

    # Fully-fused single-dispatch path (auto-selected at this shape).
    out = jax.block_until_ready(residual_block_jit(x, w1, w2, g1, b1, g2, b2, mode="auto"))
    assert out.shape == (N, C, H, W)
    # bf16 MXU operands (f32 accumulation) -> slightly relaxed tolerance vs f32 ref.
    assert jnp.allclose(out, ref, rtol=5e-2, atol=5e-2)

    # Also exercise the 3-pass tiled fallback (used when activations exceed VMEM).
    out_tiled = jax.block_until_ready(residual_block_jit(x, w1, w2, g1, b1, g2, b2, mode="tiled"))
    assert jnp.allclose(out_tiled, ref, rtol=5e-2, atol=5e-2)

    print("KERNEL_OK")
</pallas_src>

<mosaic_0001>
module attributes {stable_mosaic.version = 11 : i64} {
  func.func @kernel(%arg0: i32, %arg1: memref<4x512xf32, #tpu.memory_space<vmem>>, %arg2: memref<9x1x512xf32, #tpu.memory_space<vmem>>, %arg3: memref<4x36xbf16, #tpu.memory_space<vmem>>, %arg4: memref<4x36xbf16, #tpu.memory_space<vmem>>, %arg5: memref<4x1xf32, #tpu.memory_space<vmem>>, %arg6: memref<4x1xf32, #tpu.memory_space<vmem>>, %arg7: memref<4x1xf32, #tpu.memory_space<vmem>>, %arg8: memref<4x1xf32, #tpu.memory_space<vmem>>, %arg9: memref<4x512xf32, #tpu.memory_space<vmem>>) attributes {dimension_semantics = [#tpu.dimension_semantics<arbitrary>], iteration_bounds = array<i64: 1>, scalar_prefetch = 0 : i64, scratch_operands = 0 : i64, tpu.core_type = #tpu.core_type<tc>, window_params = [{pipeline_mode = #tpu.pipeline_mode<synchronous>, transform_indices = @transform_0, window_bounds = array<i64: 4, 512>}, {pipeline_mode = #tpu.pipeline_mode<synchronous>, transform_indices = @transform_1, window_bounds = array<i64: 9, 1, 512>}, {pipeline_mode = #tpu.pipeline_mode<synchronous>, transform_indices = @transform_2, window_bounds = array<i64: 4, 36>}, {pipeline_mode = #tpu.pipeline_mode<synchronous>, transform_indices = @transform_3, window_bounds = array<i64: 4, 36>}, {pipeline_mode = #tpu.pipeline_mode<synchronous>, transform_indices = @transform_4, window_bounds = array<i64: 4, 1>}, {pipeline_mode = #tpu.pipeline_mode<synchronous>, transform_indices = @transform_5, window_bounds = array<i64: 4, 1>}, {pipeline_mode = #tpu.pipeline_mode<synchronous>, transform_indices = @transform_6, window_bounds = array<i64: 4, 1>}, {pipeline_mode = #tpu.pipeline_mode<synchronous>, transform_indices = @transform_7, window_bounds = array<i64: 4, 1>}, {pipeline_mode = #tpu.pipeline_mode<synchronous>, transform_indices = @transform_8, window_bounds = array<i64: 4, 512>}]} {
    %c0 = arith.constant 0 : index
    %c0_0 = arith.constant 0 : index
    %0 = vector.load %arg1[%c0, %c0_0] : memref<4x512xf32, #tpu.memory_space<vmem>>, vector<4x512xf32>
    %c17_i32 = arith.constant 17 : i32
    %1 = tpu.dynamic_rotate %0 by %c17_i32 dim 1 : vector<4x512xf32>, i32 -> vector<4x512xf32>
    %c0_1 = arith.constant 0 : index
    %c0_2 = arith.constant 0 : index
    %c0_3 = arith.constant 0 : index
    %2 = vector.load %arg2[%c0_1, %c0_2, %c0_3] : memref<9x1x512xf32, #tpu.memory_space<vmem>>, vector<1x1x512xf32>
    %3 = vector.shape_cast %2 : vector<1x1x512xf32> to vector<1x512xf32>
    %4 = vector.broadcast %3 : vector<1x512xf32> to vector<4x512xf32>
    %5 = arith.mulf %1, %4 : vector<4x512xf32>
    %6 = arith.truncf %5 : vector<4x512xf32> to vector<4x512xbf16>
    %c16_i32 = arith.constant 16 : i32
    %7 = tpu.dynamic_rotate %0 by %c16_i32 dim 1 : vector<4x512xf32>, i32 -> vector<4x512xf32>
    %c1 = arith.constant 1 : index
    %c0_4 = arith.constant 0 : index
    %c0_5 = arith.constant 0 : index
    %8 = vector.load %arg2[%c1, %c0_4, %c0_5] : memref<9x1x512xf32, #tpu.memory_space<vmem>>, vector<1x1x512xf32>
    %9 = vector.shape_cast %8 : vector<1x1x512xf32> to vector<1x512xf32>
    %10 = vector.broadcast %9 : vector<1x512xf32> to vector<4x512xf32>
    %11 = arith.mulf %7, %10 : vector<4x512xf32>
    %12 = arith.truncf %11 : vector<4x512xf32> to vector<4x512xbf16>
    %c15_i32 = arith.constant 15 : i32
    %13 = tpu.dynamic_rotate %0 by %c15_i32 dim 1 : vector<4x512xf32>, i32 -> vector<4x512xf32>
    %c2 = arith.constant 2 : index
    %c0_6 = arith.constant 0 : index
    %c0_7 = arith.constant 0 : index
    %14 = vector.load %arg2[%c2, %c0_6, %c0_7] : memref<9x1x512xf32, #tpu.memory_space<vmem>>, vector<1x1x512xf32>
    %15 = vector.shape_cast %14 : vector<1x1x512xf32> to vector<1x512xf32>
    %16 = vector.broadcast %15 : vector<1x512xf32> to vector<4x512xf32>
    %17 = arith.mulf %13, %16 : vector<4x512xf32>
    %18 = arith.truncf %17 : vector<4x512xf32> to vector<4x512xbf16>
    %c1_i32 = arith.constant 1 : i32
    %19 = tpu.dynamic_rotate %0 by %c1_i32 dim 1 : vector<4x512xf32>, i32 -> vector<4x512xf32>
    %c3 = arith.constant 3 : index
    %c0_8 = arith.constant 0 : index
    %c0_9 = arith.constant 0 : index
    %20 = vector.load %arg2[%c3, %c0_8, %c0_9] : memref<9x1x512xf32, #tpu.memory_space<vmem>>, vector<1x1x512xf32>
    %21 = vector.shape_cast %20 : vector<1x1x512xf32> to vector<1x512xf32>
    %22 = vector.broadcast %21 : vector<1x512xf32> to vector<4x512xf32>
    %23 = arith.mulf %19, %22 : vector<4x512xf32>
    %24 = arith.truncf %23 : vector<4x512xf32> to vector<4x512xbf16>
    %25 = arith.truncf %0 : vector<4x512xf32> to vector<4x512xbf16>
    %c511_i32 = arith.constant 511 : i32
    %26 = tpu.dynamic_rotate %0 by %c511_i32 dim 1 : vector<4x512xf32>, i32 -> vector<4x512xf32>
    %c5 = arith.constant 5 : index
    %c0_10 = arith.constant 0 : index
    %c0_11 = arith.constant 0 : index
    %27 = vector.load %arg2[%c5, %c0_10, %c0_11] : memref<9x1x512xf32, #tpu.memory_space<vmem>>, vector<1x1x512xf32>
    %28 = vector.shape_cast %27 : vector<1x1x512xf32> to vector<1x512xf32>
    %29 = vector.broadcast %28 : vector<1x512xf32> to vector<4x512xf32>
    %30 = arith.mulf %26, %29 : vector<4x512xf32>
    %31 = arith.truncf %30 : vector<4x512xf32> to vector<4x512xbf16>
    %c497_i32 = arith.constant 497 : i32
    %32 = tpu.dynamic_rotate %0 by %c497_i32 dim 1 : vector<4x512xf32>, i32 -> vector<4x512xf32>
    %c6 = arith.constant 6 : index
    %c0_12 = arith.constant 0 : index
    %c0_13 = arith.constant 0 : index
    %33 = vector.load %arg2[%c6, %c0_12, %c0_13] : memref<9x1x512xf32, #tpu.memory_space<vmem>>, vector<1x1x512xf32>
    %34 = vector.shape_cast %33 : vector<1x1x512xf32> to vector<1x512xf32>
    %35 = vector.broadcast %34 : vector<1x512xf32> to vector<4x512xf32>
    %36 = arith.mulf %32, %35 : vector<4x512xf32>
    %37 = arith.truncf %36 : vector<4x512xf32> to vector<4x512xbf16>
    %c496_i32 = arith.constant 496 : i32
    %38 = tpu.dynamic_rotate %0 by %c496_i32 dim 1 : vector<4x512xf32>, i32 -> vector<4x512xf32>
    %c7 = arith.constant 7 : index
    %c0_14 = arith.constant 0 : index
    %c0_15 = arith.constant 0 : index
    %39 = vector.load %arg2[%c7, %c0_14, %c0_15] : memref<9x1x512xf32, #tpu.memory_space<vmem>>, vector<1x1x512xf32>
    %40 = vector.shape_cast %39 : vector<1x1x512xf32> to vector<1x512xf32>
    %41 = vector.broadcast %40 : vector<1x512xf32> to vector<4x512xf32>
    %42 = arith.mulf %38, %41 : vector<4x512xf32>
    %43 = arith.truncf %42 : vector<4x512xf32> to vector<4x512xbf16>
    %c495_i32 = arith.constant 495 : i32
    %44 = tpu.dynamic_rotate %0 by %c495_i32 dim 1 : vector<4x512xf32>, i32 -> vector<4x512xf32>
    %c8 = arith.constant 8 : index
    %c0_16 = arith.constant 0 : index
    %c0_17 = arith.constant 0 : index
    %45 = vector.load %arg2[%c8, %c0_16, %c0_17] : memref<9x1x512xf32, #tpu.memory_space<vmem>>, vector<1x1x512xf32>
    %46 = vector.shape_cast %45 : vector<1x1x512xf32> to vector<1x512xf32>
    %47 = vector.broadcast %46 : vector<1x512xf32> to vector<4x512xf32>
    %48 = arith.mulf %44, %47 : vector<4x512xf32>
    %49 = arith.truncf %48 : vector<4x512xf32> to vector<4x512xbf16>
    %50 = tpu.concatenate %6, %12, %18, %24, %25, %31, %37, %43, %49 in 0 : vector<4x512xbf16>, vector<4x512xbf16>, vector<4x512xbf16>, vector<4x512xbf16>, vector<4x512xbf16>, vector<4x512xbf16>, vector<4x512xbf16>, vector<4x512xbf16>, vector<4x512xbf16> -> vector<36x512xbf16>
    %c0_18 = arith.constant 0 : index
    %c0_19 = arith.constant 0 : index
    %51 = vector.load %arg3[%c0_18, %c0_19] : memref<4x36xbf16, #tpu.memory_space<vmem>>, vector<4x36xbf16>
    %cst = arith.constant dense<0.000000e+00> : vector<4x512xf32>
    %52 = tpu.matmul %51, %50, %cst {dimension_numbers = #tpu.dot_dimension_numbers<[1], [0], [0], [1], [0, 0, 1, 1], [], []>} : vector<4x36xbf16>, vector<36x512xbf16>, vector<4x512xf32> -> vector<4x512xf32>
    %c0_20 = arith.constant 0 : index
    %c0_21 = arith.constant 0 : index
    %53 = vector.load %arg5[%c0_20, %c0_21] : memref<4x1xf32, #tpu.memory_space<vmem>>, vector<4x1xf32>
    %c0_22 = arith.constant 0 : index
    %c0_23 = arith.constant 0 : index
    %54 = vector.load %arg6[%c0_22, %c0_23] : memref<4x1xf32, #tpu.memory_space<vmem>>, vector<4x1xf32>
    %cst_24 = arith.constant dense<0.000000e+00> : vector<4xf32>
    %55 = vector.multi_reduction <add>, %52, %cst_24 [1] : vector<4x512xf32> to vector<4xf32>
    %56 = vector.shape_cast %55 : vector<4xf32> to vector<4x1xf32>
    %cst_25 = arith.constant 0.001953125 : f32
    %57 = vector.broadcast %cst_25 : f32 to vector<4x1xf32>
    %58 = arith.mulf %56, %57 : vector<4x1xf32>
    %59 = vector.broadcast %58 : vector<4x1xf32> to vector<4x512xf32>
    %60 = arith.subf %52, %59 : vector<4x512xf32>
    %61 = arith.mulf %60, %60 : vector<4x512xf32>
    %cst_26 = arith.constant dense<0.000000e+00> : vector<4xf32>
    %62 = vector.multi_reduction <add>, %61, %cst_26 [1] : vector<4x512xf32> to vector<4xf32>
    %63 = vector.shape_cast %62 : vector<4xf32> to vector<4x1xf32>
    %cst_27 = arith.constant 0.001953125 : f32
    %64 = vector.broadcast %cst_27 : f32 to vector<4x1xf32>
    %65 = arith.mulf %63, %64 : vector<4x1xf32>
    %cst_28 = arith.constant 9.99999974E-6 : f32
    %66 = vector.broadcast %cst_28 : f32 to vector<4x1xf32>
    %67 = arith.addf %65, %66 : vector<4x1xf32>
    %68 = math.rsqrt %67 : vector<4x1xf32>
    %69 = arith.mulf %53, %68 : vector<4x1xf32>
    %70 = vector.broadcast %69 : vector<4x1xf32> to vector<4x512xf32>
    %71 = arith.mulf %60, %70 : vector<4x512xf32>
    %72 = vector.broadcast %54 : vector<4x1xf32> to vector<4x512xf32>
    %73 = arith.addf %71, %72 : vector<4x512xf32>
    %cst_29 = arith.constant 0.000000e+00 : f32
    %74 = vector.broadcast %cst_29 : f32 to vector<4x512xf32>
    %75 = arith.maximumf %73, %74 : vector<4x512xf32>
    %c17_i32_30 = arith.constant 17 : i32
    %76 = tpu.dynamic_rotate %75 by %c17_i32_30 dim 1 : vector<4x512xf32>, i32 -> vector<4x512xf32>
    %c0_31 = arith.constant 0 : index
    %c0_32 = arith.constant 0 : index
    %c0_33 = arith.constant 0 : index
    %77 = vector.load %arg2[%c0_31, %c0_32, %c0_33] : memref<9x1x512xf32, #tpu.memory_space<vmem>>, vector<1x1x512xf32>
    %78 = vector.shape_cast %77 : vector<1x1x512xf32> to vector<1x512xf32>
    %79 = vector.broadcast %78 : vector<1x512xf32> to vector<4x512xf32>
    %80 = arith.mulf %76, %79 : vector<4x512xf32>
    %81 = arith.truncf %80 : vector<4x512xf32> to vector<4x512xbf16>
    %c16_i32_34 = arith.constant 16 : i32
    %82 = tpu.dynamic_rotate %75 by %c16_i32_34 dim 1 : vector<4x512xf32>, i32 -> vector<4x512xf32>
    %c1_35 = arith.constant 1 : index
    %c0_36 = arith.constant 0 : index
    %c0_37 = arith.constant 0 : index
    %83 = vector.load %arg2[%c1_35, %c0_36, %c0_37] : memref<9x1x512xf32, #tpu.memory_space<vmem>>, vector<1x1x512xf32>
    %84 = vector.shape_cast %83 : vector<1x1x512xf32> to vector<1x512xf32>
    %85 = vector.broadcast %84 : vector<1x512xf32> to vector<4x512xf32>
    %86 = arith.mulf %82, %85 : vector<4x512xf32>
    %87 = arith.truncf %86 : vector<4x512xf32> to vector<4x512xbf16>
    %c15_i32_38 = arith.constant 15 : i32
    %88 = tpu.dynamic_rotate %75 by %c15_i32_38 dim 1 : vector<4x512xf32>, i32 -> vector<4x512xf32>
    %c2_39 = arith.constant 2 : index
    %c0_40 = arith.constant 0 : index
    %c0_41 = arith.constant 0 : index
    %89 = vector.load %arg2[%c2_39, %c0_40, %c0_41] : memref<9x1x512xf32, #tpu.memory_space<vmem>>, vector<1x1x512xf32>
    %90 = vector.shape_cast %89 : vector<1x1x512xf32> to vector<1x512xf32>
    %91 = vector.broadcast %90 : vector<1x512xf32> to vector<4x512xf32>
    %92 = arith.mulf %88, %91 : vector<4x512xf32>
    %93 = arith.truncf %92 : vector<4x512xf32> to vector<4x512xbf16>
    %c1_i32_42 = arith.constant 1 : i32
    %94 = tpu.dynamic_rotate %75 by %c1_i32_42 dim 1 : vector<4x512xf32>, i32 -> vector<4x512xf32>
    %c3_43 = arith.constant 3 : index
    %c0_44 = arith.constant 0 : index
    %c0_45 = arith.constant 0 : index
    %95 = vector.load %arg2[%c3_43, %c0_44, %c0_45] : memref<9x1x512xf32, #tpu.memory_space<vmem>>, vector<1x1x512xf32>
    %96 = vector.shape_cast %95 : vector<1x1x512xf32> to vector<1x512xf32>
    %97 = vector.broadcast %96 : vector<1x512xf32> to vector<4x512xf32>
    %98 = arith.mulf %94, %97 : vector<4x512xf32>
    %99 = arith.truncf %98 : vector<4x512xf32> to vector<4x512xbf16>
    %100 = arith.truncf %75 : vector<4x512xf32> to vector<4x512xbf16>
    %c511_i32_46 = arith.constant 511 : i32
    %101 = tpu.dynamic_rotate %75 by %c511_i32_46 dim 1 : vector<4x512xf32>, i32 -> vector<4x512xf32>
    %c5_47 = arith.constant 5 : index
    %c0_48 = arith.constant 0 : index
    %c0_49 = arith.constant 0 : index
    %102 = vector.load %arg2[%c5_47, %c0_48, %c0_49] : memref<9x1x512xf32, #tpu.memory_space<vmem>>, vector<1x1x512xf32>
    %103 = vector.shape_cast %102 : vector<1x1x512xf32> to vector<1x512xf32>
    %104 = vector.broadcast %103 : vector<1x512xf32> to vector<4x512xf32>
    %105 = arith.mulf %101, %104 : vector<4x512xf32>
    %106 = arith.truncf %105 : vector<4x512xf32> to vector<4x512xbf16>
    %c497_i32_50 = arith.constant 497 : i32
    %107 = tpu.dynamic_rotate %75 by %c497_i32_50 dim 1 : vector<4x512xf32>, i32 -> vector<4x512xf32>
    %c6_51 = arith.constant 6 : index
    %c0_52 = arith.constant 0 : index
    %c0_53 = arith.constant 0 : index
    %108 = vector.load %arg2[%c6_51, %c0_52, %c0_53] : memref<9x1x512xf32, #tpu.memory_space<vmem>>, vector<1x1x512xf32>
    %109 = vector.shape_cast %108 : vector<1x1x512xf32> to vector<1x512xf32>
    %110 = vector.broadcast %109 : vector<1x512xf32> to vector<4x512xf32>
    %111 = arith.mulf %107, %110 : vector<4x512xf32>
    %112 = arith.truncf %111 : vector<4x512xf32> to vector<4x512xbf16>
    %c496_i32_54 = arith.constant 496 : i32
    %113 = tpu.dynamic_rotate %75 by %c496_i32_54 dim 1 : vector<4x512xf32>, i32 -> vector<4x512xf32>
    %c7_55 = arith.constant 7 : index
    %c0_56 = arith.constant 0 : index
    %c0_57 = arith.constant 0 : index
    %114 = vector.load %arg2[%c7_55, %c0_56, %c0_57] : memref<9x1x512xf32, #tpu.memory_space<vmem>>, vector<1x1x512xf32>
    %115 = vector.shape_cast %114 : vector<1x1x512xf32> to vector<1x512xf32>
    %116 = vector.broadcast %115 : vector<1x512xf32> to vector<4x512xf32>
    %117 = arith.mulf %113, %116 : vector<4x512xf32>
    %118 = arith.truncf %117 : vector<4x512xf32> to vector<4x512xbf16>
    %c495_i32_58 = arith.constant 495 : i32
    %119 = tpu.dynamic_rotate %75 by %c495_i32_58 dim 1 : vector<4x512xf32>, i32 -> vector<4x512xf32>
    %c8_59 = arith.constant 8 : index
    %c0_60 = arith.constant 0 : index
    %c0_61 = arith.constant 0 : index
    %120 = vector.load %arg2[%c8_59, %c0_60, %c0_61] : memref<9x1x512xf32, #tpu.memory_space<vmem>>, vector<1x1x512xf32>
    %121 = vector.shape_cast %120 : vector<1x1x512xf32> to vector<1x512xf32>
    %122 = vector.broadcast %121 : vector<1x512xf32> to vector<4x512xf32>
    %123 = arith.mulf %119, %122 : vector<4x512xf32>
    %124 = arith.truncf %123 : vector<4x512xf32> to vector<4x512xbf16>
    %125 = tpu.concatenate %81, %87, %93, %99, %100, %106, %112, %118, %124 in 0 : vector<4x512xbf16>, vector<4x512xbf16>, vector<4x512xbf16>, vector<4x512xbf16>, vector<4x512xbf16>, vector<4x512xbf16>, vector<4x512xbf16>, vector<4x512xbf16>, vector<4x512xbf16> -> vector<36x512xbf16>
    %c0_62 = arith.constant 0 : index
    %c0_63 = arith.constant 0 : index
    %126 = vector.load %arg4[%c0_62, %c0_63] : memref<4x36xbf16, #tpu.memory_space<vmem>>, vector<4x36xbf16>
    %cst_64 = arith.constant dense<0.000000e+00> : vector<4x512xf32>
    %127 = tpu.matmul %126, %125, %cst_64 {dimension_numbers = #tpu.dot_dimension_numbers<[1], [0], [0], [1], [0, 0, 1, 1], [], []>} : vector<4x36xbf16>, vector<36x512xbf16>, vector<4x512xf32> -> vector<4x512xf32>
    %c0_65 = arith.constant 0 : index
    %c0_66 = arith.constant 0 : index
    %128 = vector.load %arg7[%c0_65, %c0_66] : memref<4x1xf32, #tpu.memory_space<vmem>>, vector<4x1xf32>
    %c0_67 = arith.constant 0 : index
    %c0_68 = arith.constant 0 : index
    %129 = vector.load %arg8[%c0_67, %c0_68] : memref<4x1xf32, #tpu.memory_space<vmem>>, vector<4x1xf32>
    %cst_69 = arith.constant dense<0.000000e+00> : vector<4xf32>
    %130 = vector.multi_reduction <add>, %127, %cst_69 [1] : vector<4x512xf32> to vector<4xf32>
    %131 = vector.shape_cast %130 : vector<4xf32> to vector<4x1xf32>
    %cst_70 = arith.constant 0.001953125 : f32
    %132 = vector.broadcast %cst_70 : f32 to vector<4x1xf32>
    %133 = arith.mulf %131, %132 : vector<4x1xf32>
    %134 = vector.broadcast %133 : vector<4x1xf32> to vector<4x512xf32>
    %135 = arith.subf %127, %134 : vector<4x512xf32>
    %136 = arith.mulf %135, %135 : vector<4x512xf32>
    %cst_71 = arith.constant dense<0.000000e+00> : vector<4xf32>
    %137 = vector.multi_reduction <add>, %136, %cst_71 [1] : vector<4x512xf32> to vector<4xf32>
    %138 = vector.shape_cast %137 : vector<4xf32> to vector<4x1xf32>
    %cst_72 = arith.constant 0.001953125 : f32
    %139 = vector.broadcast %cst_72 : f32 to vector<4x1xf32>
    %140 = arith.mulf %138, %139 : vector<4x1xf32>
    %cst_73 = arith.constant 9.99999974E-6 : f32
    %141 = vector.broadcast %cst_73 : f32 to vector<4x1xf32>
    %142 = arith.addf %140, %141 : vector<4x1xf32>
    %143 = math.rsqrt %142 : vector<4x1xf32>
    %144 = arith.mulf %128, %143 : vector<4x1xf32>
    %145 = vector.broadcast %144 : vector<4x1xf32> to vector<4x512xf32>
    %146 = arith.mulf %135, %145 : vector<4x512xf32>
    %147 = vector.broadcast %129 : vector<4x1xf32> to vector<4x512xf32>
    %148 = arith.addf %146, %147 : vector<4x512xf32>
    %149 = arith.addf %148, %0 : vector<4x512xf32>
    %cst_74 = arith.constant 0.000000e+00 : f32
    %150 = vector.broadcast %cst_74 : f32 to vector<4x512xf32>
    %151 = arith.maximumf %149, %150 : vector<4x512xf32>
    %c0_75 = arith.constant 0 : index
    %c0_76 = arith.constant 0 : index
    %152 = vector.load %arg9[%c0_75, %c0_76] : memref<4x512xf32, #tpu.memory_space<vmem>>, vector<4x512xf32>
    tpu.vector_store %arg9[%c0_75, %c0_76], %151 {strides = array<i32>} : memref<4x512xf32, #tpu.memory_space<vmem>>, vector<4x512xf32>,
    return
  }
  func.func @transform_0(%arg0: i32) -> (i32, i32) {
    %c0_i32 = arith.constant 0 : i32
    %c0_i32_0 = arith.constant 0 : i32
    %c0_i32_1 = arith.constant 0 : i32
    return %c0_i32, %c0_i32_0 : i32, i32
  }
  func.func @transform_1(%arg0: i32) -> (i32, i32, i32) {
    %c0_i32 = arith.constant 0 : i32
    %c0_i32_0 = arith.constant 0 : i32
    %c0_i32_1 = arith.constant 0 : i32
    %c0_i32_2 = arith.constant 0 : i32
    return %c0_i32, %c0_i32_0, %c0_i32_1 : i32, i32, i32
  }
  func.func @transform_2(%arg0: i32) -> (i32, i32) {
    %c0_i32 = arith.constant 0 : i32
    %c0_i32_0 = arith.constant 0 : i32
    %c0_i32_1 = arith.constant 0 : i32
    return %c0_i32, %c0_i32_0 : i32, i32
  }
  func.func @transform_3(%arg0: i32) -> (i32, i32) {
    %c0_i32 = arith.constant 0 : i32
    %c0_i32_0 = arith.constant 0 : i32
    %c0_i32_1 = arith.constant 0 : i32
    return %c0_i32, %c0_i32_0 : i32, i32
  }
  func.func @transform_4(%arg0: i32) -> (i32, i32) {
    %c0_i32 = arith.constant 0 : i32
    %c0_i32_0 = arith.constant 0 : i32
    %c0_i32_1 = arith.constant 0 : i32
    return %c0_i32, %c0_i32_0 : i32, i32
  }
  func.func @transform_5(%arg0: i32) -> (i32, i32) {
    %c0_i32 = arith.constant 0 : i32
    %c0_i32_0 = arith.constant 0 : i32
    %c0_i32_1 = arith.constant 0 : i32
    return %c0_i32, %c0_i32_0 : i32, i32
  }
  func.func @transform_6(%arg0: i32) -> (i32, i32) {
    %c0_i32 = arith.constant 0 : i32
    %c0_i32_0 = arith.constant 0 : i32
    %c0_i32_1 = arith.constant 0 : i32
    return %c0_i32, %c0_i32_0 : i32, i32
  }
  func.func @transform_7(%arg0: i32) -> (i32, i32) {
    %c0_i32 = arith.constant 0 : i32
    %c0_i32_0 = arith.constant 0 : i32
    %c0_i32_1 = arith.constant 0 : i32
    return %c0_i32, %c0_i32_0 : i32, i32
  }
  func.func @transform_8(%arg0: i32) -> (i32, i32) {
    %c0_i32 = arith.constant 0 : i32
    %c0_i32_0 = arith.constant 0 : i32
    %c0_i32_1 = arith.constant 0 : i32
    return %c0_i32, %c0_i32_0 : i32, i32
  }
}

</mosaic_0001>

<bundles_post_ra>
// kernel: residual_block.1
= control target key start
LH: loop header
LB: loop body
LE: loop exit
PB: predicated region body
PF: predicated region fallthrough
CT: control target
= control target key end

     0   :  { %s1191_s9 = smov 17   ;;  %s1193_s10 = smov 15   ;;  %v53_v46 = vlaneseq  ;;  %vm482_vm5 = vcmask 1041408   ;;  %vm495_vm9 = vcmask 1043456   ;;  %vm504_vm10 = vcmask 1045504   ;;  %s2010_s0 = inlined_call_operand.vmem [shape: f32[4,512], index: 0, kind: input, shape index: {}]   ;;  %s2011_s1 = inlined_call_operand.vmem [shape: f32[9,1,512], index: 1, kind: input, shape index: {}]   ;;  %s2012_s2 = inlined_call_operand.vmem [shape: bf16[4,36], index: 2, kind: input, shape index: {}]   ;;  %s2013_s5 = inlined_call_operand.vmem [shape: f32[4,1], index: 5, kind: input, shape index: {}]   ;;  %s2014_s4 = inlined_call_operand.vmem [shape: f32[4,1], index: 4, kind: input, shape index: {}]   ;;  %s2015_s3 = inlined_call_operand.vmem [shape: bf16[4,36], index: 3, kind: input, shape index: {}]   ;;  %s2016_s6 = inlined_call_operand.vmem [shape: f32[4,1], index: 6, kind: input, shape index: {}]   ;;  %s2017_s7 = inlined_call_operand.vmem [shape: f32[4,1], index: 7, kind: input, shape index: {}]   ;;  %s2018_s8 = inlined_call_operand.vmem [shape: f32[4,512], index: 8, kind: output, shape index: {}]  }
   0x1   :  { %v1248_v0 = vld [vmem:[%s2010_s0 + $0x8] sm:$0xff]  ;;  %v1253_v1 = vld [vmem:[%s2010_s0] sm:$0xff]  ;;  %s1192_s0 = smov 16   ;;  %s1194_s11 = smov 1   ;;  %vm550_vm11 = vcmask 293888  }
   0x2   :  { %36 = vst [vmem:[#allocation1 + $0x10] ss:$2 sm:$0xff] %v1248_v0  ;;  %s1195_s12 = smov 127   ;;  %s1196_s13 = smov 113   ;;  %v1343_v49 = vand.u32 127, %v53_v46 }
   0x3   :  { %34 = vst [vmem:[#allocation1] ss:$2 sm:$0xff] %v1253_v1  ;;  %s1197_s14 = smov 112   ;;  %s1198_s15 = smov 111   ;;  %v1348_v50 = vld [vmem:[%s2011_s1 + $0x4] sm:$0xf] }
   0x4   :  { %vm95_vm0 = vcmp.lt.s32.totalorder %v1343_v49, 16  ;;  %v1356_v52 = vld [vmem:[%s2011_s1] sm:$0xf]  ;;  %v2024_v53 = vperm.slane %v1348_v50, 3  ;;  %v2025_v54 = vperm.slane %v1348_v50, 2  ;;  %vm55_vm1 = vcmp.lt.s32.totalorder %v1343_v49, 17 }
   0x5   :  { %v2023_v59 = vperm.slane %v1356_v52, 3  ;;  %v2022_v60 = vperm.slane %v1356_v52, 2  ;;  %vm177_vm2 = vcmp.lt.s32.totalorder %v1343_v49, 1  ;;  %vm136_vm3 = vcmp.lt.s32.totalorder %v1343_v49, 15  ;;  %v1441_v46 = vld [vmem:[%s2011_s1 + $0x1c] sm:$0xf] }
   0x6   :  { %vm231_vm4 = vcmp.lt.s32.totalorder %v1343_v49, 127  ;;  %vm272_vm6 = vcmp.lt.s32.totalorder %v1343_v49, 113  ;;  %vm313_vm7 = vcmp.lt.s32.totalorder %v1343_v49, 112  ;;  %vm354_vm8 = vcmp.lt.s32.totalorder %v1343_v49, 111 }
   0x9   :  { %v40_v2 = vld.sshfl [vmem:[#allocation1 + $0x18] sm:$0xff pattern:$0x75316420]  ;;  %v39_v3 = vld.sshfl [vmem:[#allocation1 + $0x10] sm:$0xff pattern:$0x75316420] }
   0xa   :  { %51 = vrot.lane.b32.xlu1 %v40_v2, %s1191_s9  ;;  %49 = vrot.lane.b32.xlu0 %v39_v3, %s1191_s9  ;;  %78 = vst [vmem:[#allocation1 + $0x10] ss:$2 sm:$0xff] %v1248_v0  ;;  %v1260_v4 = vld.sshfl [vmem:[#allocation1] sm:$0xff pattern:$0x75316420] }
   0xb   :  { %v38_v5 = vld.sshfl [vmem:[#allocation1 + $0x8] sm:$0xff pattern:$0x75316420] }
   0xc   :  { %76 = vst [vmem:[#allocation1] ss:$2 sm:$0xff] %v1253_v1  ;;  %47 = vrot.lane.b32.xlu2 %v38_v5, %s1191_s9  ;;  %v1388_v3 = vld [vmem:[%s2011_s1 + $0xc] sm:$0xf] }
  0x11   :  { %v81_v6 = vld.sshfl [vmem:[#allocation1 + $0x10] sm:$0xff pattern:$0x75316420]  ;;  %v82_v7 = vld.sshfl [vmem:[#allocation1 + $0x18] sm:$0xff pattern:$0x75316420] }
  0x12   :  { %91 = vrot.lane.b32.xlu1 %v81_v6, %s1192_s0  ;;  %119 = vst [vmem:[#allocation1 + $0x10] ss:$2 sm:$0xff] %v1248_v0 }
  0x13   :  { %v80_v8 = vld.sshfl [vmem:[#allocation1 + $0x8] sm:$0xff pattern:$0x75316420]  ;;  %v1266_v9 = vld.sshfl [vmem:[#allocation1] sm:$0xff pattern:$0x75316420] }
  0x14   :  { %89 = vrot.lane.b32.xlu0 %v80_v8, %s1192_s0  ;;  %117 = vst [vmem:[#allocation1] ss:$2 sm:$0xff] %v1253_v1  ;;  %93 = vrot.lane.b32.xlu2 %v82_v7, %s1192_s0  ;;  %v2020_v7 = vperm.slane %v1388_v3, 2  ;;  %v2021_v8 = vperm.slane %v1388_v3, 3 }
  0x19   :  { %v122_v10 = vld.sshfl [vmem:[#allocation1 + $0x10] sm:$0xff pattern:$0x75316420]  ;;  %v1271_v11 = vld.sshfl [vmem:[#allocation1 + $0x18] sm:$0xff pattern:$0x75316420] }
  0x1a   :  { %132 = vrot.lane.b32.xlu1 %v122_v10, %s1193_s10  ;;  %160 = vst [vmem:[#allocation1 + $0x10] ss:$2 sm:$0xff] %v1248_v0 }
  0x1b   :  { %v121_v12 = vld.sshfl [vmem:[#allocation1 + $0x8] sm:$0xff pattern:$0x75316420]  ;;  %v1275_v13 = vld.sshfl [vmem:[#allocation1] sm:$0xff pattern:$0x75316420] }
  0x1c   :  { %130 = vrot.lane.b32.xlu0 %v121_v12, %s1193_s10  ;;  %158 = vst [vmem:[#allocation1] ss:$2 sm:$0xff] %v1253_v1 }
  0x21   :  { %v164_v14 = vld.sshfl [vmem:[#allocation1 + $0x18] sm:$0xff pattern:$0x75316420]  ;;  %v163_v15 = vld.sshfl [vmem:[#allocation1 + $0x10] sm:$0xff pattern:$0x75316420] }
  0x22   :  { %175 = vrot.lane.b32.xlu1 %v164_v14, %s1194_s11  ;;  %201 = vst [vmem:[#allocation1 + $0x10] ss:$2 sm:$0xff] %v1248_v0 }
  0x23   :  { %v162_v16 = vld.sshfl [vmem:[#allocation1 + $0x8] sm:$0xff pattern:$0x75316420]  ;;  %v161_v17 = vld.sshfl [vmem:[#allocation1] sm:$0xff pattern:$0x75316420] }
  0x24   :  { %173 = vrot.lane.b32.xlu0 %v163_v15, %s1194_s11  ;;  %171 = vrot.lane.b32.xlu2 %v162_v16, %s1194_s11  ;;  %199 = vst [vmem:[#allocation1] ss:$2 sm:$0xff] %v1253_v1 }
  0x29   :  { %v1284_v18 = vld.sshfl [vmem:[#allocation1 + $0x10] sm:$0xff pattern:$0x75316420]  ;;  %v1286_v19 = vld.sshfl [vmem:[#allocation1 + $0x18] sm:$0xff pattern:$0x75316420] }
  0x2a   :  { %214 = vst [vmem:[#allocation1 + $0x10] ss:$2 sm:$0xff] %v1248_v0 }
  0x2b   :  { %v1289_v20 = vld.sshfl [vmem:[#allocation1] sm:$0xff pattern:$0x75316420]  ;;  %v1291_v21 = vld.sshfl [vmem:[#allocation1 + $0x8] sm:$0xff pattern:$0x75316420] }
  0x2c   :  { %212 = vst [vmem:[#allocation1] ss:$2 sm:$0xff] %v1253_v1 }
  0x31   :  { %v218_v22 = vld.sshfl [vmem:[#allocation1 + $0x18] sm:$0xff pattern:$0x75316420]  ;;  %v217_v23 = vld.sshfl [vmem:[#allocation1 + $0x10] sm:$0xff pattern:$0x75316420] }
  0x32   :  { %229 = vrot.lane.b32.xlu1 %v218_v22, %s1195_s12  ;;  %255 = vst [vmem:[#allocation1 + $0x10] ss:$2 sm:$0xff] %v1248_v0  ;;  %v1408_v22 = vld [vmem:[%s2011_s1 + $0x8] sm:$0xf] }
  0x33   :  { %v215_v24 = vld.sshfl [vmem:[#allocation1] sm:$0xff pattern:$0x75316420]  ;;  %v216_v25 = vld.sshfl [vmem:[#allocation1 + $0x8] sm:$0xff pattern:$0x75316420] }
  0x34   :  { %223 = vrot.lane.b32.xlu0 %v215_v24, %s1195_s12  ;;  %253 = vst [vmem:[#allocation1] ss:$2 sm:$0xff] %v1253_v1 }
  0x39   :  { %v258_v26 = vld.sshfl [vmem:[#allocation1 + $0x10] sm:$0xff pattern:$0x75316420]  ;;  %v259_v27 = vld.sshfl [vmem:[#allocation1 + $0x18] sm:$0xff pattern:$0x75316420] }
  0x3a   :  { %268 = vrot.lane.b32.xlu1 %v258_v26, %s1196_s13  ;;  %270 = vrot.lane.b32.xlu2 %v259_v27, %s1196_s13  ;;  %296 = vst [vmem:[#allocation1 + $0x10] ss:$2 sm:$0xff] %v1248_v0 }
  0x3b   :  { %v256_v28 = vld.sshfl [vmem:[#allocation1] sm:$0xff pattern:$0x75316420]  ;;  %v257_v29 = vld.sshfl [vmem:[#allocation1 + $0x8] sm:$0xff pattern:$0x75316420] }
  0x3c   :  { %227 = vrot.lane.b32.xlu0 %v217_v23, %s1195_s12  ;;  %294 = vst [vmem:[#allocation1] ss:$2 sm:$0xff] %v1253_v1 }
  0x41   :  { %v299_v30 = vld.sshfl [vmem:[#allocation1 + $0x10] sm:$0xff pattern:$0x75316420]  ;;  %v300_v31 = vld.sshfl [vmem:[#allocation1 + $0x18] sm:$0xff pattern:$0x75316420] }
  0x42   :  { %309 = vrot.lane.b32.xlu1 %v299_v30, %s1197_s14  ;;  %311 = vrot.lane.b32.xlu2 %v300_v31, %s1197_s14  ;;  %337 = vst [vmem:[#allocation1 + $0x10] ss:$2 sm:$0xff] %v1248_v0  ;;  %v1421_v31 = vld [vmem:[%s2011_s1 + $0x14] sm:$0xf] }
  0x43   :  { %v298_v32 = vld.sshfl [vmem:[#allocation1 + $0x8] sm:$0xff pattern:$0x75316420]  ;;  %v297_v33 = vld.sshfl [vmem:[#allocation1] sm:$0xff pattern:$0x75316420] }
  0x44   :  { %225 = vrot.lane.b32.xlu0 %v216_v25, %s1195_s12  ;;  %335 = vst [vmem:[#allocation1] ss:$2 sm:$0xff] %v1253_v1 }
  0x49   :  { %v340_v34 = vld.sshfl [vmem:[#allocation1 + $0x10] sm:$0xff pattern:$0x75316420]  ;;  %v341_v35 = vld.sshfl [vmem:[#allocation1 + $0x18] sm:$0xff pattern:$0x75316420] }
  0x4a   :  { %307 = vrot.lane.b32.xlu2 %v298_v32, %s1197_s14  ;;  %1128 = vst [vmem:[#allocation1 + $0x10] ss:$2 sm:$0xff] %v1248_v0 }
  0x4b   :  { %v338_v36 = vld.sshfl [vmem:[#allocation1] sm:$0xff pattern:$0x75316420]  ;;  %v339_v37 = vld.sshfl [vmem:[#allocation1 + $0x8] sm:$0xff pattern:$0x75316420] }
  0x4c   :  { %264 = vrot.lane.b32.xlu0 %v256_v28, %s1196_s13  ;;  %346 = vrot.lane.b32.xlu1 %v338_v36, %s1198_s15  ;;  %1126 = vst [vmem:[#allocation1] ss:$2 sm:$0xff] %v1253_v1  ;;  %v211_v28 = vpack.c.bf16 %v1286_v19, %v1284_v18  ;;  %v1432_v19 = vld [vmem:[%s2011_s1 + $0x18] sm:$0xf] }
  0x52   :  { %350 = vrot.lane.b32.xlu2 %v340_v34, %s1198_s15 }
  0x54   :  { %305 = vrot.lane.b32.xlu0 %v297_v33, %s1197_s14  ;;  %87 = vrot.lane.b32.xlu1 %v1266_v9, %s1192_s0  ;;  %v2030_v33 = vperm.slane %v1421_v31, 2 }
  0x5a   :  { %352 = vrot.lane.b32.xlu2 %v341_v35, %s1198_s15 }
  0x5c   :  { %266 = vrot.lane.b32.xlu0 %v257_v29, %s1196_s13  ;;  %348 = vrot.lane.b32.xlu1 %v339_v37, %s1198_s15  ;;  %v2019_v29 = vperm.slane %v1408_v22, 2 }
  0x62   :  { %134 = vrot.lane.b32.xlu2 %v1271_v11, %s1193_s10 }
  0x64   :  { %169 = vrot.lane.b32.xlu0 %v161_v17, %s1194_s11  ;;  %128 = vrot.lane.b32.xlu1 %v1275_v13, %s1193_s10 }
  0x66   :  { %v1327_v38 = vpop.permute.xlu2 %47 }
  0x6a   :  { %45 = vrot.lane.b32.xlu2 %v1260_v4, %s1191_s9 }
  0x6e   :  { %v1331_v41 = vpop.permute.xlu2 %93 }
  0x7c   :  { %v1329_v39 = vpop.permute.xlu1 %51  ;;  %v50_v40 = vpop.permute.xlu0 %49 }
  0x7d   :  { %v56_v61 = vsel %vm55_vm1, %v50_v40, %v1329_v39  ;;  %v57_v62 = vsel %vm55_vm1, %v1327_v38, %v50_v40 }
  0x7e   :  { %v1335_v44 = vpop.permute.xlu2 %171  ;;  %v73_v1 = vmul.f32 %v2023_v59, %v56_v61  ;;  %v72_v2 = vmul.f32 %v2022_v60, %v57_v62 }
  0x80   :  { %v75_v9 = vpack.c.bf16 %v73_v1, %v72_v2  ;;  %v210_v2 = vpack.c.bf16 %v1291_v21, %v1289_v20  ;;  %v323_v20 = vperm.slane %v1441_v46, 2 }
  0x82   :  { %v380_v17 = vunpack.c.l.b16 %v75_v9  ;;  %v381_v25 = vunpack.c.h.b16 %v75_v9 }
  0x84   :  { %v92_v42 = vpop.permute.xlu1 %91  ;;  %v384_v32 = vpack.c.b16 %v380_v17, %v380_v17  ;;  %v385_v40 = vpack.c.b16 %v381_v25, %v381_v25 }
  0x85   :  { %v96_v55 = vsel %vm95_vm0, %v92_v42, %v1331_v41 }
  0x86   :  { %v1333_v43 = vpop.permute.xlu0 %89  ;;  %v114_v63 = vmul.f32 %v2024_v53, %v96_v55  ;;  %v428_v55 = vunpack.c.l.b16 %v211_v28  ;;  %v104_v53 = vperm.slane %v1348_v50, 1 }
  0x87   :  { %v97_v56 = vsel %vm95_vm0, %v1333_v43, %v92_v42  ;;  %v2029_v42 = vperm.slane %v1421_v31, 3 }
  0x88   :  { %v113_v0 = vmul.f32 %v2025_v54, %v97_v56 }
  0x8a   :  { %v116_v4 = vpack.c.bf16 %v114_v63, %v113_v0  ;;  %v2028_v0 = vperm.slane %v1432_v19, 2 }
  0x8c   :  { %v1337_v45 = vpop.permute.xlu1 %132  ;;  %v390_v13 = vunpack.c.l.b16 %v116_v4  ;;  %v391_v14 = vunpack.c.h.b16 %v116_v4  ;;  %v2034_v4 = vperm.slane %v1441_v46, 1 }
  0x8e   :  { %v1339_v47 = vpop.permute.xlu0 %130  ;;  %v394_v23 = vpack.c.b16 %v390_v13, %v390_v13  ;;  %v395_v24 = vpack.c.b16 %v391_v14, %v391_v14  ;;  %v2027_v13 = vperm.slane %v1421_v31, 0  ;;  %v2026_v14 = vperm.slane %v1421_v31, 1 }
  0x8f   :  { %v138_v18 = vsel %vm136_vm3, %v1339_v47, %v1337_v45 }
  0x90   :  { %v398_v35 = vrot.slane %v394_v23, 6  ;;  %v399_v36 = vrot.slane %v395_v24, 6  ;;  %v1447_v63 = vmul.f32 %v2019_v29, %v138_v18  ;;  %v2033_v18 = vperm.slane %v1432_v19, 3 }
  0x91   :  { %v324_v29 = vperm.slane %v1441_v46, 3 }
  0x92   :  { %v1462_v9 = vsel %vm482_vm5, %v384_v32, %v398_v35  ;;  %v426_v32 = vunpack.c.l.b16 %v210_v2 }
  0x94   :  { %v1341_v48 = vpop.permute.xlu2 %270  ;;  %v1351_v51 = vpop.permute.xlu1 %175 }
  0x96   :  { %v174_v57 = vpop.permute.xlu0 %173 }
  0x97   :  { %v178_v10 = vsel %vm177_vm2, %v174_v57, %v1351_v51  ;;  %v179_v11 = vsel %vm177_vm2, %v1335_v44, %v174_v57  ;;  %v429_v57 = vunpack.c.h.b16 %v211_v28 }
  0x98   :  { %v195_v15 = vmul.f32 %v2020_v7, %v179_v11  ;;  %v196_v16 = vmul.f32 %v2021_v8, %v178_v10  ;;  %v1465_v10 = vsel %vm482_vm5, %v385_v40, %v399_v36  ;;  %v2038_v7 = vperm.slane %v1348_v50, 0 }
  0x99   :  { %v1474_v17 = vpack.c.b16 %v429_v57, %v429_v57  ;;  %v427_v57 = vunpack.c.h.b16 %v210_v2  ;;  %v321_v2 = vperm.slane %v1441_v46, 0 }
  0x9a   :  { %v198_v30 = vpack.c.bf16 %v196_v16, %v195_v15  ;;  %v1472_v16 = vpack.c.b16 %v428_v55, %v428_v55 }
  0x9b   :  { %v1512_v54 = vpack.c.b16 %v427_v57, %v427_v57 }
  0x9c   :  { %v1367_v58 = vpop.permute.xlu2 %311  ;;  %v414_v61 = vunpack.c.l.b16 %v198_v30  ;;  %v415_v62 = vunpack.c.h.b16 %v198_v30 }
  0x9e   :  { %v1476_v23 = vpack.c.b16 %v414_v61, %v414_v61  ;;  %v1478_v24 = vpack.c.b16 %v415_v62, %v415_v62  ;;  %v2037_v61 = vperm.slane %v1356_v52, 0 }
  0xa4   :  { %v230_v5 = vpop.permute.xlu1 %229  ;;  %v1391_v6 = vpop.permute.xlu2 %307 }
  0xa6   :  { %v224_v12 = vpop.permute.xlu0 %223 }
  0xa7   :  { %v235_v56 = vsel %vm231_vm4, %v230_v5, %v224_v12 }
  0xa8   :  { %v250_v11 = vmul.f32 %v2029_v42, %v235_v56 }
  0xac   :  { %v1411_v26 = vpop.permute.xlu1 %268  ;;  %v1413_v27 = vpop.permute.xlu2 %350 }
  0xae   :  { %v228_v34 = vpop.permute.xlu0 %227 }
  0xaf   :  { %v232_v37 = vsel %vm231_vm4, %v228_v34, %v230_v5  ;;  %v1459_v5 = vld [vmem:[%s2011_s1 + $0x20] sm:$0xf] }
  0xb0   :  { %v249_v1 = vmul.f32 %v2030_v33, %v232_v37  ;;  %v2032_v30 = vperm.slane %v1459_v5, 2  ;;  %v2031_v37 = vperm.slane %v1408_v22, 3  ;;  %v2035_v56 = vperm.slane %v1459_v5, 3 }
  0xb2   :  { %v252_v25 = vpack.c.bf16 %v250_v11, %v249_v1  ;;  %v273_v1 = vsel %vm272_vm6, %v1411_v26, %v1341_v48 }
  0xb4   :  { %v310_v21 = vpop.permute.xlu1 %309  ;;  %v353_v15 = vpop.permute.xlu2 %352  ;;  %v438_v11 = vunpack.c.l.b16 %v252_v25 }
  0xb5   :  { %v355_v60 = vsel %vm354_vm8, %v1413_v27, %v353_v15  ;;  %v315_v57 = vsel %vm313_vm7, %v1391_v6, %v310_v21 }
  0xb6   :  { %v226_v28 = vpop.permute.xlu0 %225 }
  0xb7   :  { %v233_v35 = vsel %vm231_vm4, %v226_v28, %v228_v34  ;;  %v234_v36 = vsel %vm231_vm4, %v224_v12, %v226_v28  ;;  %v2036_v34 = vperm.slane %v1356_v52, 1 }
  0xb8   :  { %v247_v40 = vmul.f32 %v2027_v13, %v234_v36  ;;  %v248_v55 = vmul.f32 %v2026_v14, %v233_v35  ;;  %v1501_v36 = vpack.c.b16 %v426_v32, %v426_v32  ;;  %v439_v35 = vunpack.c.h.b16 %v252_v25 }
  0xb9   :  { %v290_v25 = vmul.f32 %v2028_v0, %v273_v1  ;;  %v1522_v14 = vpack.c.b16 %v438_v11, %v438_v11  ;;  %v314_v13 = vsel %vm313_vm7, %v310_v21, %v1367_v58  ;;  %v372_v11 = vmul.f32 %v2032_v30, %v355_v60 }
  0xba   :  { %v251_v28 = vpack.c.bf16 %v248_v55, %v247_v40  ;;  %v280_v40 = vperm.slane %v1432_v19, 0  ;;  %v1536_v42 = vpack.c.b16 %v439_v35, %v439_v35  ;;  %v145_v55 = vperm.slane %v1408_v22, 1 }
  0xbc   :  { %v436_v8 = vunpack.c.l.b16 %v251_v28  ;;  %v1509_v59 = vpop.permute.xlu2 %134  ;;  %v437_v12 = vunpack.c.h.b16 %v251_v28 }
  0xbd   :  { %v137_v32 = vsel %vm136_vm3, %v1337_v45, %v1509_v59 }
  0xbe   :  { %v1530_v1 = vpop.permute.xlu0 %264  ;;  %v155_v0 = vmul.f32 %v2031_v37, %v137_v32  ;;  %v1534_v45 = vpop.permute.xlu1 %346  ;;  %v440_v62 = vpack.c.b16 %v436_v8, %v436_v8  ;;  %v330_v37 = vmul.f32 %v2034_v4, %v315_v57  ;;  %v447_v57 = vrot.slane %v1536_v42, 6 }
  0xbf   :  { %v276_v33 = vsel %vm272_vm6, %v1341_v48, %v1530_v1  ;;  %v358_v21 = vsel %vm354_vm8, %v353_v15, %v1534_v45  ;;  %v331_v15 = vmul.f32 %v323_v20, %v314_v13 }
  0xc0   :  { %v291_v32 = vmul.f32 %v2033_v18, %v276_v33  ;;  %v373_v60 = vmul.f32 %v2035_v56, %v358_v21  ;;  %v157_v8 = vpack.c.bf16 %v155_v0, %v1447_v63  ;;  %v186_v33 = vperm.slane %v1388_v3, 1 }
  0xc1   :  { %v446_v18 = vrot.slane %v1522_v14, 6  ;;  %v144_v21 = vperm.slane %v1408_v22, 0  ;;  %v441_v56 = vpack.c.b16 %v437_v12, %v437_v12  ;;  %v444_v30 = vrot.slane %v440_v62, 6 }
  0xc2   :  { %v293_v28 = vpack.c.bf16 %v291_v32, %v290_v25  ;;  %v375_v4 = vpack.c.bf16 %v373_v60, %v372_v11  ;;  %v404_v42 = vunpack.c.l.b16 %v157_v8  ;;  %v405_v25 = vunpack.c.h.b16 %v157_v8 }
  0xc4   :  { %v452_v35 = vunpack.c.l.b16 %v293_v28  ;;  %v46_v48 = vpop.permute.xlu2 %45  ;;  %v476_v13 = vunpack.c.l.b16 %v375_v4  ;;  %v477_v14 = vunpack.c.h.b16 %v375_v4  ;;  %v453_v8 = vunpack.c.h.b16 %v293_v28 }
  0xc5   :  { %v58_v63 = vsel %vm55_vm1, %v46_v48, %v1327_v38  ;;  %v59_v0 = vsel %vm55_vm1, %v1329_v39, %v46_v48  ;;  %v445_v48 = vrot.slane %v441_v56, 6  ;;  %v408_v28 = vpack.c.b16 %v404_v42, %v404_v42 }
  0xc6   :  { %v70_v12 = vmul.f32 %v2037_v61, %v59_v0  ;;  %v71_v62 = vmul.f32 %v2036_v34, %v58_v63  ;;  %v306_v11 = vpop.permute.xlu0 %305  ;;  %v88_v32 = vpop.permute.xlu1 %87  ;;  %v480_v0 = vpack.c.b16 %v476_v13, %v476_v13  ;;  %v456_v34 = vpack.c.b16 %v452_v35, %v452_v35 }
  0xc7   :  { %v316_v38 = vsel %vm313_vm7, %v306_v11, %v1391_v6  ;;  %v317_v39 = vsel %vm313_vm7, %v1367_v58, %v306_v11  ;;  %v98_v4 = vsel %vm95_vm0, %v88_v32, %v1333_v43  ;;  %v99_v60 = vsel %vm95_vm0, %v1331_v41, %v88_v32 }
  0xc8   :  { %v332_v63 = vmul.f32 %v324_v29, %v317_v39  ;;  %v111_v6 = vmul.f32 %v2038_v7, %v99_v60  ;;  %v112_v58 = vmul.f32 %v104_v53, %v98_v4  ;;  %v481_v11 = vpack.c.b16 %v477_v14, %v477_v14 }
  0xc9   :  { %v1592_v43 = vpack.c.bf16 %v71_v62, %v70_v12  ;;  %v329_v41 = vmul.f32 %v321_v2, %v316_v38  ;;  %v561_v39 = vsel %vm482_vm5, %v480_v0, 0  ;;  %v409_v60 = vpack.c.b16 %v405_v25, %v405_v25 }
  0xca   :  { %v334_v56 = vpack.c.bf16 %v332_v63, %v331_v15  ;;  %v115_v32 = vpack.c.bf16 %v112_v58, %v111_v6  ;;  %v564_v61 = vsel %vm482_vm5, %v481_v11, 0  ;;  %597 = vmatpush.bf16.msra.mxu2 %v561_v39  ;;  %v525_v13 = vsel %vm482_vm5, %v1472_v16, %v446_v18 }
  0xcb   :  { %610 = vmatpush.bf16.msra.mxu3 %v564_v61  ;;  %v528_v14 = vsel %vm482_vm5, %v1474_v17, %v447_v57  ;;  %v534_v12 = vsel %vm495_vm9, %v525_v13, %v456_v34  ;;  %v457_v15 = vpack.c.b16 %v453_v8, %v453_v8  ;;  %v1605_v42 = vsel %vm482_vm5, %v1501_v36, %v444_v30 }
  0xcc   :  { %v462_v7 = vunpack.c.l.b16 %v334_v56  ;;  %v463_v35 = vunpack.c.h.b16 %v334_v56  ;;  %v1609_v25 = vsel %vm482_vm5, %v1512_v54, %v445_v48  ;;  %v378_v61 = vunpack.c.l.b16 %v1592_v43 }
  0xcd   :  { %v333_v62 = vpack.c.bf16 %v330_v37, %v329_v41  ;;  %v501_v34 = vsel %vm495_vm9, %v1462_v9, %v408_v28  ;;  %v503_v54 = vsel %vm495_vm9, %v1465_v10, %v409_v60  ;;  %v388_v57 = vunpack.c.l.b16 %v115_v32 }
  0xce   :  { %v267_v38 = vpop.permute.xlu0 %266  ;;  %v349_v16 = vpop.permute.xlu1 %348  ;;  %v466_v18 = vpack.c.b16 %v462_v7, %v462_v7  ;;  %v467_v4 = vpack.c.b16 %v463_v35, %v463_v35  ;;  %v2039_v7 = vperm.slane %v1432_v19, 1  ;;  %v389_v48 = vunpack.c.h.b16 %v115_v32 }
  0xcf   :  { %v274_v17 = vsel %vm272_vm6, %v267_v38, %v1411_v26  ;;  %v275_v30 = vsel %vm272_vm6, %v1530_v1, %v267_v38  ;;  %v356_v26 = vsel %vm354_vm8, %v349_v16, %v1413_v27  ;;  %v357_v1 = vsel %vm354_vm8, %v1534_v45, %v349_v16 }
  0xd0   :  { %v288_v37 = vmul.f32 %v280_v40, %v275_v30  ;;  %v289_v36 = vmul.f32 %v2039_v7, %v274_v17  ;;  %v2040_v9 = vperm.slane %v1459_v5, 0  ;;  %v2041_v10 = vperm.slane %v1459_v5, 1 }
  0xd1   :  { %v470_v58 = vrot.slane %v466_v18, 2  ;;  %v471_v0 = vrot.slane %v467_v4, 2  ;;  %v460_v11 = vunpack.c.l.b16 %v333_v62  ;;  %v536_v41 = vsel %vm495_vm9, %v528_v14, %v457_v15 }
  0xd2   :  { %v370_v8 = vmul.f32 %v2040_v9, %v357_v1  ;;  %v371_v63 = vmul.f32 %v2041_v10, %v356_v26  ;;  %v292_v6 = vpack.c.bf16 %v289_v36, %v288_v37  ;;  %v2042_v27 = vrot.slane %v1476_v23, 2  ;;  %v549_v10 = vld [vmem:[%s2012_s2] sm:$0x3] }
  0xd3   :  { %v2043_v45 = vrot.slane %v1478_v24, 2  ;;  %v544_v13 = vsel %vm504_vm10, %v534_v12, %v470_v58  ;;  %v547_v35 = vsel %vm504_vm10, %v536_v41, %v471_v0  ;;  %v392_v38 = vpack.c.b16 %v388_v57, %v388_v57 }
  0xd4   :  { %v512_v56 = vsel %vm504_vm10, %v501_v34, %v2042_v27  ;;  %v374_v32 = vpack.c.bf16 %v371_v63, %v370_v8  ;;  %v450_v39 = vunpack.c.l.b16 %v292_v6  ;;  %v451_v60 = vunpack.c.h.b16 %v292_v6  ;;  %598 = vmatpush.bf16.msra.mxu2 %v544_v13  ;;  %611 = vmatpush.bf16.msra.mxu3 %v547_v35 }
  0xd5   :  { %v515_v28 = vsel %vm504_vm10, %v503_v54, %v2043_v45  ;;  %v461_v15 = vunpack.c.h.b16 %v333_v62  ;;  %v393_v23 = vpack.c.b16 %v389_v48, %v389_v48  ;;  %v464_v24 = vpack.c.b16 %v460_v11, %v460_v11 }
  0xd6   :  { %v474_v16 = vunpack.c.l.b16 %v374_v32  ;;  %v475_v14 = vunpack.c.h.b16 %v374_v32  ;;  %v170_v18 = vpop.permute.xlu0 %169  ;;  %v129_v4 = vpop.permute.xlu1 %128  ;;  %v454_v17 = vpack.c.b16 %v450_v39, %v450_v39  ;;  %v455_v30 = vpack.c.b16 %v451_v60, %v451_v60 }
  0xd7   :  { %v180_v34 = vsel %vm177_vm2, %v170_v18, %v1335_v44  ;;  %v181_v12 = vsel %vm177_vm2, %v1351_v51, %v170_v18  ;;  %v139_v54 = vsel %vm136_vm3, %v129_v4, %v1339_v47  ;;  %v140_v62 = vsel %vm136_vm3, %v1509_v59, %v129_v4 }
  0xd8   :  { %v2044_v37 = vperm.slane %v1388_v3, 0  ;;  %v194_v36 = vmul.f32 %v186_v33, %v180_v34  ;;  %v152_v44 = vmul.f32 %v144_v21, %v140_v62  ;;  %v153_v51 = vmul.f32 %v145_v55, %v139_v54  ;;  %599 = vmatpush.bf16.msra.mxu2 %v512_v56  ;;  %612 = vmatpush.bf16.msra.mxu3 %v515_v28 }
  0xd9   :  { %v379_v26 = vunpack.c.h.b16 %v1592_v43  ;;  %v478_v47 = vpack.c.b16 %v474_v16, %v474_v16  ;;  %v479_v1 = vpack.c.b16 %v475_v14, %v475_v14  ;;  %v465_v57 = vpack.c.b16 %v461_v15, %v461_v15 }
  0xda   :  { %v193_v7 = vmul.f32 %v2044_v37, %v181_v12  ;;  %v382_v59 = vpack.c.b16 %v378_v61, %v378_v61  ;;  %v396_v48 = vrot.slane %v392_v38, 6  ;;  %v156_v8 = vpack.c.bf16 %v153_v51, %v152_v44 }
  0xdb   :  { %v397_v63 = vrot.slane %v393_v23, 6  ;;  %v555_v6 = vsel %vm482_vm5, %v478_v47, 0  ;;  %v558_v58 = vsel %vm482_vm5, %v479_v1, 0  ;;  %v530_v43 = vsel %vm495_vm9, %v1605_v42, %v454_v17  ;;  %1170 = vmatmul.msk.bf16.vlgmr.msra.gmra.mxu2 %vm550_vm11, %v549_v10  ;;  %1171 = vmatmul.msk.bf16.vlgmr.msra.gmra.mxu3 %vm550_vm11, %v549_v10 }
  0xdc   :  { %v197_v9 = vpack.c.bf16 %v194_v36, %v193_v7  ;;  %v402_v0 = vunpack.c.l.b16 %v156_v8  ;;  %v403_v11 = vunpack.c.h.b16 %v156_v8  ;;  %571 = vmatpush.bf16.msra.mxu0 %v555_v6  ;;  %584 = vmatpush.bf16.msra.mxu1 %v558_v58  ;;  %v532_v61 = vsel %vm495_vm9, %v1609_v25, %v455_v30 }
  0xdd   :  { %v383_v27 = vpack.c.b16 %v379_v26, %v379_v26  ;;  %v468_v56 = vrot.slane %v464_v24, 2  ;;  %v469_v45 = vrot.slane %v465_v57, 2  ;;  %v485_v42 = vsel %vm482_vm5, %v382_v59, %v396_v48 }
  0xde   :  { %v412_v41 = vunpack.c.l.b16 %v197_v9  ;;  %v413_v28 = vunpack.c.h.b16 %v197_v9  ;;  %v406_v32 = vpack.c.b16 %v402_v0, %v402_v0  ;;  %v407_v60 = vpack.c.b16 %v403_v11, %v403_v11 }
  0xdf   :  { %v538_v13 = vsel %vm504_vm10, %v530_v43, %v468_v56  ;;  %v541_v35 = vsel %vm504_vm10, %v532_v61, %v469_v45  ;;  %v488_v25 = vsel %vm482_vm5, %v383_v27, %v397_v63 }
  0xe0   :  { %v416_v39 = vpack.c.b16 %v412_v41, %v412_v41  ;;  %v417_v38 = vpack.c.b16 %v413_v28, %v413_v28  ;;  %572 = vmatpush.bf16.msra.mxu0 %v538_v13  ;;  %585 = vmatpush.bf16.msra.mxu1 %v541_v35  ;;  %v497_v14 = vsel %vm495_vm9, %v485_v42, %v406_v32  ;;  %v619_v28 = vld [vmem:[%s2013_s5] sm:$0xf]  ;;  %v1199_v32 = vmov 0  }
  0xe1   :  { %v499_v15 = vsel %vm495_vm9, %v488_v25, %v407_v60  ;;  %1185 = vset.pattern.permute.xlu1 %v1199_v32  ;;  %1186 = vset.pattern.permute.xlu0 %v1199_v32 }
  0xe2   :  { %v420_v16 = vrot.slane %v416_v39, 2  ;;  %v421_v23 = vrot.slane %v417_v38, 2  ;;  %671 = vperm.xlu1 %1185, %v619_v28  }
  0xe4   :  { %v506_v18 = vsel %vm504_vm10, %v497_v14, %v420_v16  ;;  %v509_v4 = vsel %vm504_vm10, %v499_v15, %v421_v23  ;;  %v618_v14 = vld [vmem:[%s2014_s4] sm:$0xf] }
  0xe5   :  { %573 = vmatpush.bf16.msra.mxu0 %v506_v18  ;;  %586 = vmatpush.bf16.msra.mxu1 %v509_v4 }
  0xe8   :  { %1168 = vmatmul.msk.bf16.vlgmr.msra.gmra.mxu0 %vm550_vm11, %v549_v10  ;;  %1169 = vmatmul.msk.bf16.vlgmr.msra.gmra.mxu1 %vm550_vm11, %v549_v10 }
 0x154   :  { %v672_v4 = vpop.permute.xlu1 %671 }
 0x15e   :  { %v601_v17 = vpop.f32.mrf.mxu2  ;;  %v614_v24 = vpop.f32.mrf.mxu3 }
 0x15f   :  { %v623_v12 = vsel %vm495_vm9, %v601_v17, 0.0  ;;  %v625_v7 = vsel %vm495_vm9, %v614_v24, 0.0 }
 0x165   :  { %v575_v30 = vpop.f32.mrf.mxu0  ;;  %v588_v34 = vpop.f32.mrf.mxu1 }
 0x166   :  { %v620_v54 = vsel %vm495_vm9, %v575_v30, 0.0  ;;  %v621_v62 = vsel %vm495_vm9, %v588_v34, 0.0  ;;  %v603_v36 = vpop.f32.mrf.mxu2  ;;  %v616_v44 = vpop.f32.mrf.mxu3 }
 0x167   :  { %v622_v37 = vadd.f32 %v621_v62, %v620_v54 }
 0x169   :  { %v624_v51 = vadd.f32 %v623_v12, %v622_v37 }
 0x16b   :  { %v626_v26 = vadd.f32 %v625_v7, %v624_v51 }
 0x16d   :  { %v590_v47 = vpop.f32.mrf.mxu1  ;;  %627 = vadd.xlane.f32.xlu2 %v626_v26  ;;  %v577_v1 = vpop.f32.mrf.mxu0 }
 0x1e0   :  { %v628_v57 = vpop.xlane.xlu2 %627 }
 0x1e1   :  { %v629_v59 = vmul.f32 0.001953125, %v628_v57 }
 0x1e3   :  { %v630_v48 = vsub.f32 %v575_v30, %v629_v59  ;;  %v631_v9 = vsub.f32 %v588_v34, %v629_v59  ;;  %v632_v8 = vsub.f32 %v601_v17, %v629_v59  ;;  %v633_v10 = vsub.f32 %v614_v24, %v629_v59 }
 0x1e5   :  { %v634_v63 = vmul.f32 %v630_v48, %v630_v48  ;;  %v635_v6 = vmul.f32 %v631_v9, %v631_v9  ;;  %v636_v58 = vmul.f32 %v632_v8, %v632_v8  ;;  %v637_v43 = vmul.f32 %v633_v10, %v633_v10 }
 0x1e7   :  { %v638_v0 = vsel %vm495_vm9, %v634_v63, 0.0  ;;  %v639_v11 = vsel %vm495_vm9, %v635_v6, 0.0  ;;  %v641_v41 = vsel %vm495_vm9, %v636_v58, 0.0  ;;  %v643_v56 = vsel %vm495_vm9, %v637_v43, 0.0 }
 0x1e8   :  { %v640_v61 = vadd.f32 %v639_v11, %v638_v0  ;;  %v2045_v11 = vperm.slane %v1459_v5, 3 }
 0x1ea   :  { %v642_v27 = vadd.f32 %v641_v41, %v640_v61 }
 0x1ec   :  { %v644_v45 = vadd.f32 %v643_v56, %v642_v27  ;;  %v2046_v27 = vperm.slane %v1459_v5, 2 }
 0x1ee   :  { %645 = vadd.xlane.f32.xlu0 %v644_v45 }
 0x261   :  { %v646_v39 = vpop.xlane.xlu0 %645 }
 0x262   :  { %v647_v42 = vmul.f32 0.001953125, %v646_v39 }
 0x264   :  { %v648_v60 = vadd.f32 1e-05, %v647_v42 }
 0x266   :  { %1187 = vrsqrt.f32 %v648_v60  ;;  %vm655_vm13 = vweird.f32 %v648_v60 }
 0x26c   :  { %v1188_v13 = vpop.eup %1187 }
 0x26d   :  { %v650_v35 = vmul.f32 %v1188_v13, %v648_v60  ;;  %vm656_vm12 = vweird.f32 %v1188_v13 }
 0x26e   :  { %vm657_vm14 = vmor %vm655_vm13, %vm656_vm12 }
 0x26f   :  { %v651_v38 = vmul.f32 %v1188_v13, %v650_v35 }
 0x271   :  { %v652_v25 = vmul.f32 0.5, %v651_v38 }
 0x273   :  { %v653_v16 = vsub.f32 1.5, %v652_v25 }
 0x275   :  { %v654_v15 = vmul.f32 %v1188_v13, %v653_v16 }
 0x277   :  { %v658_v23 = vsel %vm657_vm14, %v1188_v13, %v654_v15 }
 0x278   :  { %v659_v18 = vmul.f32 %v658_v23, %v618_v14  ;;  %v2047_v14 = vperm.slane %v1421_v31, 2  ;;  %v2048_v23 = vperm.slane %v1421_v31, 3 }
 0x27a   :  { %662 = vperm.xlu1 %1185, %v659_v18  }
 0x2ec   :  { %v663_v17 = vpop.permute.xlu1 %662 }
 0x2ed   :  { %v665_v24 = vmul.f32 %v663_v17, %v630_v48  ;;  %v668_v30 = vmul.f32 %v663_v17, %v633_v10  ;;  %v667_v37 = vmul.f32 %v663_v17, %v632_v8  ;;  %v666_v36 = vmul.f32 %v663_v17, %v631_v9 }
 0x2ef   :  { %v674_v34 = vadd.f32 %v672_v4, %v665_v24  ;;  %v677_v12 = vadd.f32 %v672_v4, %v668_v30  ;;  %v676_v7 = vadd.f32 %v672_v4, %v667_v37  ;;  %v675_v51 = vadd.f32 %v672_v4, %v666_v36 }
 0x2f1   :  { %v1701_v54 = vmax.f32 %v674_v34, 0.0  ;;  %v1703_v62 = vmax.f32 %v677_v12, 0.0  ;;  %v1711_v44 = vmax.f32 %v676_v7, 0.0  ;;  %v1719_v26 = vmax.f32 %v675_v51, 0.0 }
 0x2f3   :  { %816 = vrot.lane.b32.xlu0 %v1703_v62, %s1198_s15  ;;  %810 = vrot.lane.b32.xlu2 %v1701_v54, %s1198_s15  ;;  %v755_v51 = vpack.c.bf16 %v1703_v62, %v1711_v44 }
 0x2f4   :  { %756 = vrot.lane.b32.xlu1 %v1701_v54, %s1195_s12 }
 0x2fb   :  { %774 = vrot.lane.b32.xlu0 %v1701_v54, %s1196_s13  ;;  %798 = vrot.lane.b32.xlu2 %v1703_v62, %s1197_s14 }
 0x2fc   :  { %760 = vrot.lane.b32.xlu1 %v1711_v44, %s1195_s12 }
 0x303   :  { %702 = vrot.lane.b32.xlu0 %v1719_v26, %s1192_s0  ;;  %780 = vrot.lane.b32.xlu2 %v1703_v62, %s1196_s13 }
 0x304   :  { %762 = vrot.lane.b32.xlu1 %v1703_v62, %s1195_s12 }
 0x30b   :  { %758 = vrot.lane.b32.xlu0 %v1719_v26, %s1195_s12  ;;  %706 = vrot.lane.b32.xlu2 %v1703_v62, %s1192_s0 }
 0x30c   :  { %814 = vrot.lane.b32.xlu1 %v1711_v44, %s1198_s15 }
 0x313   :  { %686 = vrot.lane.b32.xlu0 %v1711_v44, %s1191_s9  ;;  %684 = vrot.lane.b32.xlu2 %v1719_v26, %s1191_s9 }
 0x314   :  { %792 = vrot.lane.b32.xlu1 %v1701_v54, %s1197_s14 }
 0x31b   :  { %740 = vrot.lane.b32.xlu0 %v1711_v44, %s1194_s11  ;;  %738 = vrot.lane.b32.xlu2 %v1719_v26, %s1194_s11 }
 0x31c   :  { %796 = vrot.lane.b32.xlu1 %v1711_v44, %s1197_s14 }
 0x323   :  { %720 = vrot.lane.b32.xlu0 %v1719_v26, %s1193_s10  ;;  %794 = vrot.lane.b32.xlu2 %v1719_v26, %s1197_s14 }
 0x324   :  { %778 = vrot.lane.b32.xlu1 %v1711_v44, %s1196_s13 }
 0x32b   :  { %776 = vrot.lane.b32.xlu0 %v1719_v26, %s1196_s13  ;;  %724 = vrot.lane.b32.xlu2 %v1703_v62, %s1193_s10 }
 0x32c   :  { %704 = vrot.lane.b32.xlu1 %v1711_v44, %s1192_s0 }
 0x333   :  { %736 = vrot.lane.b32.xlu0 %v1701_v54, %s1194_s11  ;;  %682 = vrot.lane.b32.xlu2 %v1701_v54, %s1191_s9 }
 0x334   :  { %812 = vrot.lane.b32.xlu1 %v1719_v26, %s1198_s15 }
 0x33c   :  { %688 = vrot.lane.b32.xlu1 %v1703_v62, %s1191_s9 }
 0x344   :  { %742 = vrot.lane.b32.xlu1 %v1703_v62, %s1194_s11 }
 0x34c   :  { %722 = vrot.lane.b32.xlu1 %v1711_v44, %s1193_s10 }
 0x34d   :  { %v1773_v47 = vpop.permute.xlu2 %810 }
 0x354   :  { %700 = vrot.lane.b32.xlu1 %v1701_v54, %s1192_s0 }
 0x355   :  { %v799_v59 = vpop.permute.xlu2 %798 }
 0x35c   :  { %718 = vrot.lane.b32.xlu1 %v1701_v54, %s1193_s10 }
 0x35d   :  { %v781_v10 = vpop.permute.xlu2 %780 }
 0x365   :  { %v817_v1 = vpop.permute.xlu0 %816  ;;  %v1789_v41 = vpop.permute.xlu2 %706 }
 0x366   :  { %v757_v57 = vpop.permute.xlu1 %756  ;;  %v821_v6 = vsel %vm354_vm8, %v817_v1, %v1773_v47 }
 0x367   :  { %v825_v61 = vmul.f32 %v821_v6, %v2045_v11 }
 0x36d   :  { %v1775_v48 = vpop.permute.xlu0 %774  ;;  %v1805_v4 = vpop.permute.xlu2 %684 }
 0x36e   :  { %v761_v9 = vpop.permute.xlu1 %760 }
 0x375   :  { %v1777_v8 = vpop.permute.xlu0 %702  ;;  %v1819_v6 = vpop.permute.xlu2 %738 }
 0x376   :  { %v763_v63 = vpop.permute.xlu1 %762 }
 0x377   :  { %v764_v42 = vsel %vm231_vm4, %v761_v9, %v763_v63  ;;  %v767_v60 = vsel %vm231_vm4, %v763_v63, %v757_v57 }
 0x378   :  { %v770_v15 = vmul.f32 %v764_v42, %v2047_v14  ;;  %v771_v18 = vmul.f32 %v767_v60, %v2048_v23  ;;  %v2050_v42 = vperm.slane %v1432_v19, 2 }
 0x37a   :  { %v773_v17 = vpack.c.bf16 %v771_v18, %v770_v15 }
 0x37c   :  { %v890_v7 = vunpack.c.l.b16 %v773_v17 }
 0x37d   :  { %v759_v58 = vpop.permute.xlu0 %758 }
 0x37e   :  { %v1782_v43 = vpop.permute.xlu1 %814  ;;  %v894_v11 = vpack.c.b16 %v890_v7, %v890_v7 }
 0x37f   :  { %v818_v0 = vsel %vm354_vm8, %v1782_v43, %v817_v1  ;;  %v891_v1 = vunpack.c.h.b16 %v773_v17 }
 0x380   :  { %v824_v56 = vmul.f32 %v818_v0, %v2046_v27  ;;  %v785_v0 = vsel %vm272_vm6, %v781_v10, %v1775_v48  ;;  %v880_v27 = vunpack.c.l.b16 %v755_v51 }
 0x381   :  { %v895_v62 = vpack.c.b16 %v891_v1, %v891_v1 }
 0x382   :  { %v827_v45 = vpack.c.bf16 %v825_v61, %v824_v56  ;;  %v884_v15 = vpack.c.b16 %v880_v27, %v880_v27 }
 0x383   :  { %v899_v14 = vrot.slane %v895_v62, 6 }
 0x384   :  { %v928_v28 = vunpack.c.l.b16 %v827_v45  ;;  %v929_v32 = vunpack.c.h.b16 %v827_v45 }
 0x385   :  { %v1793_v39 = vpop.permute.xlu0 %686 }
 0x386   :  { %v793_v13 = vpop.permute.xlu1 %792  ;;  %v932_v35 = vpack.c.b16 %v928_v28, %v928_v28  ;;  %v933_v38 = vpack.c.b16 %v929_v32, %v929_v32  ;;  %v2049_v28 = vperm.slane %v1432_v19, 3 }
 0x387   :  { %v803_v30 = vsel %vm313_vm7, %v799_v59, %v793_v13 }
 0x388   :  { %v1009_v25 = vsel %vm482_vm5, %v932_v35, 0  ;;  %v1012_v16 = vsel %vm482_vm5, %v933_v38, 0  ;;  %v807_v36 = vmul.f32 %v803_v30, %v324_v29  ;;  %v766_v29 = vsel %vm231_vm4, %v757_v57, %v759_v58 }
 0x389   :  { %1045 = vmatpush.bf16.msrb.mxu2 %v1009_v25  ;;  %1058 = vmatpush.bf16.msrb.mxu3 %v1012_v16  ;;  %v789_v32 = vmul.f32 %v785_v0, %v2049_v28  ;;  %v898_v35 = vrot.slane %v894_v11, 6  ;;  %v2052_v57 = vperm.slane %v1421_v31, 1  ;;  %v881_v25 = vunpack.c.h.b16 %v755_v51 }
 0x38b   :  { %v885_v7 = vpack.c.b16 %v881_v25, %v881_v25 }
 0x38d   :  { %v1807_v24 = vpop.permute.xlu0 %740  ;;  %v977_v27 = vsel %vm482_vm5, %v885_v7, %v899_v14  ;;  %v2055_v14 = vperm.slane %v1459_v5, 0 }
 0x38e   :  { %v797_v34 = vpop.permute.xlu1 %796 }
 0x38f   :  { %v800_v12 = vsel %vm313_vm7, %v797_v34, %v799_v59 }
 0x390   :  { %v806_v37 = vmul.f32 %v800_v12, %v323_v20  ;;  %v765_v20 = vsel %vm231_vm4, %v759_v58, %v761_v9  ;;  %v2051_v9 = vperm.slane %v1421_v31, 0 }
 0x391   :  { %v769_v58 = vmul.f32 %v765_v20, %v2052_v57 }
 0x392   :  { %v809_v63 = vpack.c.bf16 %v807_v36, %v806_v37  ;;  %v768_v38 = vmul.f32 %v766_v29, %v2051_v9  ;;  %v974_v37 = vsel %vm482_vm5, %v884_v15, %v898_v35  ;;  %v795_v36 = vpop.permute.xlu2 %794 }
 0x393   :  { %v801_v11 = vsel %vm313_vm7, %v795_v36, %v797_v34  ;;  %v802_v62 = vsel %vm313_vm7, %v793_v13, %v795_v36 }
 0x394   :  { %v914_v56 = vunpack.c.l.b16 %v809_v63  ;;  %v915_v45 = vunpack.c.h.b16 %v809_v63  ;;  %v772_v30 = vpack.c.bf16 %v769_v58, %v768_v38  ;;  %v804_v35 = vmul.f32 %v802_v62, %v321_v2 }
 0x395   :  { %v1824_v59 = vpop.permute.xlu0 %720  ;;  %v2056_v2 = vperm.slane %v1459_v5, 1 }
 0x396   :  { %v779_v61 = vpop.permute.xlu1 %778  ;;  %v919_v23 = vpack.c.b16 %v915_v45, %v915_v45  ;;  %v888_v13 = vunpack.c.l.b16 %v772_v30 }
 0x397   :  { %v782_v44 = vsel %vm272_vm6, %v779_v61, %v781_v10  ;;  %v918_v10 = vpack.c.b16 %v914_v56, %v914_v56  ;;  %v2053_v56 = vperm.slane %v1432_v19, 1 }
 0x398   :  { %v788_v60 = vmul.f32 %v782_v44, %v2050_v42  ;;  %v923_v29 = vrot.slane %v919_v23, 2  ;;  %v892_v57 = vpack.c.b16 %v888_v13, %v888_v13 }
 0x399   :  { %v922_v20 = vrot.slane %v918_v10, 2 }
 0x39a   :  { %v791_v16 = vpack.c.bf16 %v789_v32, %v788_v60  ;;  %v2054_v32 = vperm.slane %v1441_v46, 1  ;;  %v889_v60 = vunpack.c.h.b16 %v772_v30 }
 0x39c   :  { %v904_v18 = vunpack.c.l.b16 %v791_v16  ;;  %v905_v17 = vunpack.c.h.b16 %v791_v16  ;;  %v805_v42 = vmul.f32 %v801_v11, %v2054_v32  ;;  %v893_v16 = vpack.c.b16 %v889_v60, %v889_v60 }
 0x39d   :  { %v777_v12 = vpop.permute.xlu0 %776  ;;  %v2058_v60 = vperm.slane %v1348_v50, 3 }
 0x39e   :  { %v783_v1 = vsel %vm272_vm6, %v777_v12, %v779_v61  ;;  %v784_v31 = vsel %vm272_vm6, %v1775_v48, %v777_v12  ;;  %v705_v51 = vpop.permute.xlu1 %704  ;;  %v908_v63 = vpack.c.b16 %v904_v18, %v904_v18  ;;  %v909_v0 = vpack.c.b16 %v905_v17, %v905_v17 }
 0x39f   :  { %v786_v48 = vmul.f32 %v784_v31, %v280_v40  ;;  %v787_v45 = vmul.f32 %v783_v1, %v2053_v56  ;;  %v754_v40 = vpack.c.bf16 %v1719_v26, %v1701_v54  ;;  %v808_v19 = vpack.c.bf16 %v805_v42, %v804_v35 }
 0x3a0   :  { %v983_v44 = vsel %vm495_vm9, %v974_v37, %v908_v63  ;;  %v985_v61 = vsel %vm495_vm9, %v977_v27, %v909_v0  ;;  %v896_v12 = vrot.slane %v892_v57, 6  ;;  %v708_v27 = vsel %vm95_vm0, %v705_v51, %v1789_v41 }
 0x3a1   :  { %v993_v28 = vsel %vm504_vm10, %v983_v44, %v922_v20  ;;  %v996_v34 = vsel %vm504_vm10, %v985_v61, %v923_v29  ;;  %v790_v9 = vpack.c.bf16 %v787_v45, %v786_v48  ;;  %v878_v26 = vunpack.c.l.b16 %v754_v40 }
 0x3a2   :  { %1046 = vmatpush.bf16.msrb.mxu2 %v993_v28  ;;  %1059 = vmatpush.bf16.msrb.mxu3 %v996_v34  ;;  %v879_v23 = vunpack.c.h.b16 %v754_v40  ;;  %v912_v17 = vunpack.c.l.b16 %v808_v19  ;;  %v913_v30 = vunpack.c.h.b16 %v808_v19  ;;  %v709_v48 = vsel %vm95_vm0, %v1777_v8, %v705_v51 }
 0x3a3   :  { %v902_v10 = vunpack.c.l.b16 %v790_v9  ;;  %v903_v54 = vunpack.c.h.b16 %v790_v9  ;;  %v882_v36 = vpack.c.b16 %v878_v26, %v878_v26  ;;  %v2057_v42 = vperm.slane %v1348_v50, 2 }
 0x3a4   :  { %v883_v1 = vpack.c.b16 %v879_v23, %v879_v23  ;;  %v916_v11 = vpack.c.b16 %v912_v17, %v912_v17  ;;  %v917_v20 = vpack.c.b16 %v913_v30, %v913_v30  ;;  %v715_v35 = vmul.f32 %v708_v27, %v2058_v60 }
 0x3a5   :  { %v907_v31 = vpack.c.b16 %v903_v54, %v903_v54  ;;  %v968_v29 = vsel %vm482_vm5, %v882_v36, %v896_v12  ;;  %v714_v13 = vmul.f32 %v709_v48, %v2057_v42  ;;  %v691_v40 = vsel %vm55_vm1, %v1805_v4, %v1793_v39  ;;  %v737_v30 = vpop.permute.xlu0 %736 }
 0x3a6   :  { %v813_v38 = vpop.permute.xlu1 %812  ;;  %v920_v28 = vrot.slane %v916_v11, 2  ;;  %v921_v34 = vrot.slane %v917_v20, 2  ;;  %v745_v19 = vsel %vm177_vm2, %v1819_v6, %v1807_v24  ;;  %v2064_v11 = vperm.slane %v1408_v22, 3 }
 0x3a7   :  { %v819_v58 = vsel %vm354_vm8, %v813_v38, %v1782_v43  ;;  %v820_v25 = vsel %vm354_vm8, %v1773_v47, %v813_v38  ;;  %v897_v43 = vrot.slane %v893_v16, 6  ;;  %v906_v47 = vpack.c.b16 %v902_v10, %v902_v10 }
 0x3a8   :  { %v822_v46 = vmul.f32 %v820_v25, %v2055_v14  ;;  %v823_v15 = vmul.f32 %v819_v58, %v2056_v2  ;;  %v2059_v38 = vperm.slane %v1356_v52, 3  ;;  %v2060_v16 = vperm.slane %v1356_v52, 2 }
 0x3a9   :  { %v971_v61 = vsel %vm482_vm5, %v883_v1, %v897_v43  ;;  %v979_v56 = vsel %vm495_vm9, %v968_v29, %v906_v47  ;;  %v2061_v2 = vperm.slane %v1388_v3, 3  ;;  %v2062_v10 = vperm.slane %v1388_v3, 2 }
 0x3aa   :  { %v826_v18 = vpack.c.bf16 %v823_v15, %v822_v46  ;;  %v981_v45 = vsel %vm495_vm9, %v971_v61, %v907_v31  ;;  %v987_v51 = vsel %vm504_vm10, %v979_v56, %v920_v28  ;;  %v696_v14 = vmul.f32 %v691_v40, %v2060_v16  ;;  %v1914_v46 = vpop.permute.xlu2 %724 }
 0x3ab   :  { %v990_v9 = vsel %vm504_vm10, %v981_v45, %v921_v34  ;;  %v750_v54 = vmul.f32 %v745_v19, %v2062_v10  ;;  %v746_v29 = vsel %vm177_vm2, %v737_v30, %v1819_v6 }
 0x3ac   :  { %v926_v37 = vunpack.c.l.b16 %v826_v18  ;;  %v927_v7 = vunpack.c.h.b16 %v826_v18  ;;  %v749_v6 = vmul.f32 %v746_v29, %v186_v33 }
 0x3ae   :  { %v1875_v63 = vpop.permute.xlu1 %688  ;;  %v930_v0 = vpack.c.b16 %v926_v37, %v926_v37  ;;  %v931_v5 = vpack.c.b16 %v927_v7, %v927_v7 }
 0x3af   :  { %v690_v32 = vsel %vm55_vm1, %v1793_v39, %v1875_v63  ;;  %v717_v39 = vpack.c.bf16 %v715_v35, %v714_v13  ;;  %v2065_v35 = vperm.slane %v1388_v3, 0  ;;  %v2066_v3 = vperm.slane %v1348_v50, 0  ;;  %v998_v50 = vld [vmem:[%s2015_s3] sm:$0x3] }
 0x3b0   :  { %v1003_v62 = vsel %vm482_vm5, %v930_v0, 0  ;;  %v1006_v44 = vsel %vm482_vm5, %v931_v5, 0  ;;  %v697_v57 = vmul.f32 %v690_v32, %v2059_v38  ;;  %v2063_v0 = vperm.slane %v1408_v22, 2 }
 0x3b1   :  { %1019 = vmatpush.bf16.msrb.mxu0 %v1003_v62  ;;  %1032 = vmatpush.bf16.msrb.mxu1 %v1006_v44  ;;  %v842_v18 = vunpack.c.l.b16 %v717_v39  ;;  %v843_v17 = vunpack.c.h.b16 %v717_v39 }
 0x3b2   :  { %v699_v26 = vpack.c.bf16 %v697_v57, %v696_v14  ;;  %v683_v27 = vpop.permute.xlu2 %682 }
 0x3b3   :  { %v846_v1 = vpack.c.b16 %v842_v18, %v842_v18  ;;  %v847_v31 = vpack.c.b16 %v843_v17, %v843_v17  ;;  %v692_v13 = vsel %vm55_vm1, %v683_v27, %v1805_v4  ;;  %v693_v60 = vsel %vm55_vm1, %v1875_v63, %v683_v27 }
 0x3b4   :  { %v832_v12 = vunpack.c.l.b16 %v699_v26  ;;  %v833_v43 = vunpack.c.h.b16 %v699_v26 }
 0x3b5   :  { %1020 = vmatpush.bf16.msrb.mxu0 %v987_v51  ;;  %1033 = vmatpush.bf16.msrb.mxu1 %v990_v9  ;;  %v850_v28 = vrot.slane %v846_v1, 6  ;;  %v851_v34 = vrot.slane %v847_v31, 6 }
 0x3b6   :  { %v743_v58 = vpop.permute.xlu1 %742  ;;  %v836_v62 = vpack.c.b16 %v832_v12, %v832_v12  ;;  %v837_v44 = vpack.c.b16 %v833_v43, %v833_v43 }
 0x3b7   :  { %v744_v25 = vsel %vm177_vm2, %v1807_v24, %v743_v58  ;;  %v747_v61 = vsel %vm177_vm2, %v743_v58, %v737_v30 }
 0x3b8   :  { %v751_v15 = vmul.f32 %v744_v25, %v2061_v2  ;;  %v748_v51 = vmul.f32 %v747_v61, %v2065_v35  ;;  %v942_v19 = vsel %vm482_vm5, %v836_v62, %v850_v28  ;;  %v945_v57 = vsel %vm482_vm5, %v837_v44, %v851_v34 }
 0x3b9   :  { %v2067_v2 = vperm.slane %v1356_v52, 0 }
 0x3ba   :  { %v753_v23 = vpack.c.bf16 %v751_v15, %v750_v54 }
 0x3bb   :  { %v694_v15 = vmul.f32 %v693_v60, %v2067_v2 }
 0x3bc   :  { %v866_v36 = vunpack.c.l.b16 %v753_v23  ;;  %v867_v47 = vunpack.c.h.b16 %v753_v23 }
 0x3be   :  { %v723_v24 = vpop.permute.xlu1 %722  ;;  %v870_v56 = vpack.c.b16 %v866_v36, %v866_v36  ;;  %v871_v45 = vpack.c.b16 %v867_v47, %v867_v47 }
 0x3bf   :  { %v726_v37 = vsel %vm136_vm3, %v723_v24, %v1914_v46  ;;  %v727_v7 = vsel %vm136_vm3, %v1824_v59, %v723_v24 }
 0x3c0   :  { %v732_v5 = vmul.f32 %v727_v7, %v2063_v0  ;;  %v733_v20 = vmul.f32 %v726_v37, %v2064_v11  ;;  %v874_v58 = vrot.slane %v870_v56, 2  ;;  %v875_v63 = vrot.slane %v871_v45, 2 }
 0x3c2   :  { %v735_v48 = vpack.c.bf16 %v733_v20, %v732_v5 }
 0x3c4   :  { %v856_v32 = vunpack.c.l.b16 %v735_v48  ;;  %v857_v42 = vunpack.c.h.b16 %v735_v48 }
 0x3c6   :  { %v701_v9 = vpop.permute.xlu1 %700  ;;  %v860_v40 = vpack.c.b16 %v856_v32, %v856_v32  ;;  %v861_v38 = vpack.c.b16 %v857_v42, %v857_v42 }
 0x3c7   :  { %v710_v4 = vsel %vm95_vm0, %v701_v9, %v1777_v8  ;;  %v711_v33 = vsel %vm95_vm0, %v1789_v41, %v701_v9  ;;  %v752_v41 = vpack.c.bf16 %v749_v6, %v748_v51 }
 0x3c8   :  { %v712_v25 = vmul.f32 %v711_v33, %v2066_v3  ;;  %v713_v16 = vmul.f32 %v710_v4, %v104_v53  ;;  %v951_v14 = vsel %vm495_vm9, %v942_v19, %v860_v40  ;;  %v953_v39 = vsel %vm495_vm9, %v945_v57, %v861_v38 }
 0x3c9   :  { %v961_v8 = vsel %vm504_vm10, %v951_v14, %v874_v58  ;;  %v964_v10 = vsel %vm504_vm10, %v953_v39, %v875_v63  ;;  %v2068_v53 = vperm.slane %v1356_v52, 1  ;;  %v864_v12 = vunpack.c.l.b16 %v752_v41 }
 0x3ca   :  { %v716_v54 = vpack.c.bf16 %v713_v16, %v712_v25  ;;  %1047 = vmatpush.bf16.msrb.mxu2 %v961_v8  ;;  %1060 = vmatpush.bf16.msrb.mxu3 %v964_v10  ;;  %v865_v43 = vunpack.c.h.b16 %v752_v41 }
 0x3cb   :  { %v695_v26 = vmul.f32 %v692_v13, %v2068_v53  ;;  %v868_v20 = vpack.c.b16 %v864_v12, %v864_v12 }
 0x3cc   :  { %v840_v23 = vunpack.c.l.b16 %v716_v54  ;;  %v841_v18 = vunpack.c.h.b16 %v716_v54  ;;  %v869_v29 = vpack.c.b16 %v865_v43, %v865_v43 }
 0x3cd   :  { %v698_v17 = vpack.c.bf16 %v695_v26, %v694_v15  ;;  %1174 = vmatmul.msk.bf16.vlgmr.msrb.gmra.mxu2 %vm550_vm11, %v998_v50  ;;  %1175 = vmatmul.msk.bf16.vlgmr.msrb.gmra.mxu3 %vm550_vm11, %v998_v50 }
 0x3ce   :  { %v719_v30 = vpop.permute.xlu1 %718  ;;  %v844_v24 = vpack.c.b16 %v840_v23, %v840_v23  ;;  %v845_v37 = vpack.c.b16 %v841_v18, %v841_v18 }
 0x3cf   :  { %v728_v7 = vsel %vm136_vm3, %v719_v30, %v1824_v59  ;;  %v729_v52 = vsel %vm136_vm3, %v1914_v46, %v719_v30  ;;  %v830_v1 = vunpack.c.l.b16 %v698_v17  ;;  %v831_v31 = vunpack.c.h.b16 %v698_v17 }
 0x3d0   :  { %v730_v36 = vmul.f32 %v729_v52, %v144_v21  ;;  %v731_v47 = vmul.f32 %v728_v7, %v145_v55  ;;  %v848_v5 = vrot.slane %v844_v24, 6  ;;  %v849_v11 = vrot.slane %v845_v37, 6  ;;  %v1066_v52 = vld [vmem:[%s2016_s6] sm:$0xf] }
 0x3d1   :  { %v834_v59 = vpack.c.b16 %v830_v1, %v830_v1  ;;  %v835_v44 = vpack.c.b16 %v831_v31, %v831_v31  ;;  %v872_v46 = vrot.slane %v868_v20, 2  ;;  %v873_v21 = vrot.slane %v869_v29, 2  ;;  %v1067_v31 = vld [vmem:[%s2017_s7] sm:$0xf] }
 0x3d2   :  { %v734_v0 = vpack.c.bf16 %v731_v47, %v730_v36 }
 0x3d3   :  { %v936_v48 = vsel %vm482_vm5, %v834_v59, %v848_v5  ;;  %v939_v22 = vsel %vm482_vm5, %v835_v44, %v849_v11  ;;  %v1131_v59 = vld.sshfl [vmem:[#allocation1 + $0x10] sm:$0xff pattern:$0x75316420]  ;;  %v1132_v44 = vld.sshfl [vmem:[#allocation1 + $0x18] sm:$0xff pattern:$0x75316420] }
 0x3d4   :  { %v854_v27 = vunpack.c.l.b16 %v734_v0  ;;  %v855_v62 = vunpack.c.h.b16 %v734_v0 }
 0x3d6   :  { %v858_v61 = vpack.c.b16 %v854_v27, %v854_v27  ;;  %v859_v49 = vpack.c.b16 %v855_v62, %v855_v62  ;;  %v1129_v27 = vld.sshfl [vmem:[#allocation1] sm:$0xff pattern:$0x75316420]  ;;  %v1130_v62 = vld.sshfl [vmem:[#allocation1 + $0x8] sm:$0xff pattern:$0x75316420] }
 0x3d8   :  { %v947_v55 = vsel %vm495_vm9, %v936_v48, %v858_v61  ;;  %v949_v56 = vsel %vm495_vm9, %v939_v22, %v859_v49 }
 0x3d9   :  { %v955_v45 = vsel %vm504_vm10, %v947_v55, %v872_v46  ;;  %v958_v28 = vsel %vm504_vm10, %v949_v56, %v873_v21 }
 0x3da   :  { %1021 = vmatpush.bf16.msrb.mxu0 %v955_v45  ;;  %1034 = vmatpush.bf16.msrb.mxu1 %v958_v28 }
 0x3dd   :  { %1172 = vmatmul.msk.bf16.vlgmr.msrb.gmra.mxu0 %vm550_vm11, %v998_v50  ;;  %1173 = vmatmul.msk.bf16.vlgmr.msrb.gmra.mxu1 %vm550_vm11, %v998_v50 }
 0x450   :  { %v1049_v34 = vpop.f32.mrf.mxu2  ;;  %v1062_v32 = vpop.f32.mrf.mxu3 }
 0x451   :  { %v1071_v35 = vsel %vm495_vm9, %v1049_v34, 0.0  ;;  %v1073_v19 = vsel %vm495_vm9, %v1062_v32, 0.0 }
 0x458   :  { %v1051_v42 = vpop.f32.mrf.mxu2  ;;  %v1064_v13 = vpop.f32.mrf.mxu3 }
 0x45a   :  { %v1023_v6 = vpop.f32.mrf.mxu0  ;;  %v1036_v60 = vpop.f32.mrf.mxu1 }
 0x45b   :  { %v1068_v51 = vsel %vm495_vm9, %v1023_v6, 0.0  ;;  %v1069_v9 = vsel %vm495_vm9, %v1036_v60, 0.0 }
 0x45c   :  { %v1070_v40 = vadd.f32 %v1069_v9, %v1068_v51 }
 0x45e   :  { %v1072_v38 = vadd.f32 %v1071_v35, %v1070_v40 }
 0x460   :  { %v1074_v57 = vadd.f32 %v1073_v19, %v1072_v38 }
 0x462   :  { %v1038_v4 = vpop.f32.mrf.mxu1  ;;  %1075 = vadd.xlane.f32.xlu2 %v1074_v57  ;;  %v1025_v33 = vpop.f32.mrf.mxu0 }
 0x4d5   :  { %v1076_v58 = vpop.xlane.xlu2 %1075 }
 0x4d6   :  { %v1077_v63 = vmul.f32 0.001953125, %v1076_v58 }
 0x4d8   :  { %v1078_v3 = vsub.f32 %v1023_v6, %v1077_v63  ;;  %v1079_v25 = vsub.f32 %v1036_v60, %v1077_v63  ;;  %v1080_v16 = vsub.f32 %v1049_v34, %v1077_v63  ;;  %v1081_v14 = vsub.f32 %v1062_v32, %v1077_v63 }
 0x4da   :  { %v1082_v39 = vmul.f32 %v1078_v3, %v1078_v3  ;;  %v1083_v2 = vmul.f32 %v1079_v25, %v1079_v25  ;;  %v1084_v15 = vmul.f32 %v1080_v16, %v1080_v16  ;;  %v1085_v8 = vmul.f32 %v1081_v14, %v1081_v14 }
 0x4dc   :  { %v1086_v10 = vsel %vm495_vm9, %v1082_v39, 0.0  ;;  %v1087_v41 = vsel %vm495_vm9, %v1083_v2, 0.0  ;;  %v1089_v50 = vsel %vm495_vm9, %v1084_v15, 0.0  ;;  %v1091_v26 = vsel %vm495_vm9, %v1085_v8, 0.0 }
 0x4dd   :  { %v1088_v54 = vadd.f32 %v1087_v41, %v1086_v10 }
 0x4df   :  { %v1090_v53 = vadd.f32 %v1089_v50, %v1088_v54 }
 0x4e1   :  { %v1092_v23 = vadd.f32 %v1091_v26, %v1090_v53 }
 0x4e3   :  { %1093 = vadd.xlane.f32.xlu0 %v1092_v23 }
 0x556   :  { %v1094_v18 = vpop.xlane.xlu0 %1093 }
 0x557   :  { %v1095_v17 = vmul.f32 0.001953125, %v1094_v18 }
 0x559   :  { %v1096_v30 = vadd.f32 1e-05, %v1095_v17 }
 0x55b   :  { %1189 = vrsqrt.f32 %v1096_v30  ;;  %vm1103_vm0 = vweird.f32 %v1096_v30 }
 0x561   :  { %v1190_v12 = vpop.eup %1189 }
 0x562   :  { %v1098_v43 = vmul.f32 %v1190_v12, %v1096_v30  ;;  %vm1104_vm15 = vweird.f32 %v1190_v12 }
 0x563   :  { %vm1105_vm1 = vmor %vm1103_vm0, %vm1104_vm15 }
 0x564   :  { %v1099_v24 = vmul.f32 %v1190_v12, %v1098_v43 }
 0x566   :  { %v1100_v37 = vmul.f32 0.5, %v1099_v24 }
 0x568   :  { %v1101_v7 = vsub.f32 1.5, %v1100_v37 }
 0x56a   :  { %v1102_v36 = vmul.f32 %v1190_v12, %v1101_v7 }
 0x56c   :  { %v1106_v47 = vsel %vm1105_vm1, %v1190_v12, %v1102_v36 }
 0x56d   :  { %v1107_v1 = vmul.f32 %v1106_v47, %v1066_v52 }
 0x56f   :  { %1110 = vperm.xlu1 %1185, %v1107_v1  }
 0x577   :  { %1119 = vperm.xlu1 %1185, %v1067_v31  }
 0x5e1   :  { %v1111_v0 = vpop.permute.xlu1 %1110 }
 0x5e2   :  { %v1113_v5 = vmul.f32 %v1111_v0, %v1078_v3  ;;  %v1114_v11 = vmul.f32 %v1111_v0, %v1079_v25  ;;  %v1115_v20 = vmul.f32 %v1111_v0, %v1080_v16  ;;  %v1116_v29 = vmul.f32 %v1111_v0, %v1081_v14 }
 0x5e9   :  { %v1120_v61 = vpop.permute.xlu1 %1119 }
 0x5ea   :  { %v1122_v49 = vadd.f32 %v1120_v61, %v1113_v5  ;;  %v1123_v46 = vadd.f32 %v1120_v61, %v1114_v11  ;;  %v1124_v48 = vadd.f32 %v1120_v61, %v1115_v20  ;;  %v1125_v21 = vadd.f32 %v1120_v61, %v1116_v29 }
 0x5ec   :  { %v1137_v22 = vadd.f32 %v1129_v27, %v1122_v49  ;;  %v1138_v55 = vadd.f32 %v1130_v62, %v1123_v46  ;;  %v1139_v56 = vadd.f32 %v1131_v59, %v1124_v48  ;;  %v1140_v45 = vadd.f32 %v1132_v44, %v1125_v21 }
 0x5ee   :  { %v1142_v28 = vmax.f32 %v1138_v55, 0.0  ;;  %v1144_v34 = vmax.f32 %v1140_v45, 0.0  ;;  %v1141_v32 = vmax.f32 %v1137_v22, 0.0  ;;  %v1143_v42 = vmax.f32 %v1139_v56, 0.0 }
 0x5f0   :  { %v1149_v13 = vrot.slane %v1142_v28, 4  ;;  %v1150_v6 = vrot.slane %v1144_v34, 4 }
 0x5f2   :  { %v1151_v60 = vsel %vm495_vm9, %v1141_v32, %v1149_v13  ;;  %v1152_v35 = vsel %vm495_vm9, %v1143_v42, %v1150_v6 }
 0x5f3   :  { %1155 = vst [vmem:[%s2018_s8] sm:$0xff] %v1151_v60 }
 0x5f4   :  { %1156 = vst [vmem:[%s2018_s8 + $0x8] sm:$0xff] %v1152_v35 }

</bundles_post_ra>
